<compile_context>
chip_gen: v6e
topology: v6e:2x2x1
jax: 0.10.0
libtpu: 0.0.40
codegen_flags: <defaults>
</compile_context>

<pallas_src>
import jax
import jax.numpy as jnp
from jax import lax
from jax.experimental import pallas as pl
from jax.experimental.pallas import tpu as pltpu


def _round_up(x, m):
    return ((x + m - 1) // m) * m


def _head_kernel(x_ref, w_ref, b_ref, o_ref):
    # x_ref: (bblk, C, H, W) f32   -- backbone feature-map chunk (NCHW)
    # w_ref: (C, nf_pad)     bf16  -- fused [clf | pad | clf2 | pad] weight
    # b_ref: (1, nf_pad)     f32   -- fused bias (unscaled)
    # o_ref: (bblk, nf_pad)  f32   -- sum_W + 0.5*max_W pooled logits
    bblk, c, h, w_len = x_ref.shape

    # H-mean fused in-kernel (sublane reduce over the (H, W) trailing tile).
    xm = jnp.sum(x_ref[...], axis=2) * (1.0 / h)              # (bblk, C, W) f32
    xm = xm.astype(jnp.bfloat16)                              # MXU operand

    wv = w_ref[...]                                           # (C, nf_pad) bf16

    rows = []
    for b in range(bblk):                                     # static unroll
        # Contract over C without any pre-transpose: (C, W)^T @ (C, Nf).
        l = lax.dot_general(
            xm[b], wv,
            dimension_numbers=(((0,), (0,)), ((), ())),
            preferred_element_type=jnp.float32)               # (W, nf_pad) f32
        rows.append(jnp.sum(l, axis=0, keepdims=True)
                    + 0.5 * jnp.max(l, axis=0, keepdims=True))  # (1, nf_pad)

    pooled = rows[0] if bblk == 1 else jnp.concatenate(rows, axis=0)
    # Bias folded after pooling: sum_W(l+b) + .5*max_W(l+b) = pooled(l) + (W+.5)*b
    o_ref[...] = pooled + (w_len + 0.5) * b_ref[...]


def _vmem_estimate(bblk, C, H, W, nf_pad):
    in_blk = 2 * bblk * C * H * W * 4            # f32 feats, double-buffered
    w_blk = 2 * C * nf_pad * 2                   # bf16 fused weight, double-buffered
    b_blk = 2 * nf_pad * 4                       # f32 bias, double-buffered
    out_blk = 2 * bblk * nf_pad * 4              # f32 output, double-buffered
    live = bblk * C * W * (4 + 2) + W * nf_pad * 4 + bblk * nf_pad * 4
    return in_blk + w_blk + b_blk + out_blk + live


def _pick_batch_block(B, C, H, W, nf_pad, budget_bytes):
    """Single grid step (bblk = B) unless VMEM forces splitting.

    v5e/v6e have one TensorCore, so extra grid steps are pure overhead; on v7x
    the duplicated weight DMA + ~600-cycle step cost outweigh 2-core sharding
    for chunks this small. Only split when the feature block doesn't fit."""
    if _vmem_estimate(B, C, H, W, nf_pad) <= budget_bytes:
        return B
    for d in sorted((d for d in range(1, B) if B % d == 0), reverse=True):
        if d % 8 != 0 and d != 1:
            continue  # keep output blocks sublane-friendly when splitting
        if _vmem_estimate(d, C, H, W, nf_pad) <= budget_bytes:
            return d
    return 1


def make_sed_attn_cnn11_head(w1, b1, w2, b2, *, vmem_budget_bytes=40 << 20):
    """Prepares the fused head ONCE (concat + lane pad + bf16 cast hoisted out
    of the per-call path) and returns a jitted forward over the feature map.

    w1: (C, N1), b1: (N1,), w2: (C, N2), b2: (N2,)
    (torch nn.Linear weights transposed to (in, out))."""
    C, n1 = w1.shape
    n2 = w2.shape[1]
    n1_pad = _round_up(n1, 128)              # clf2 slice starts lane-aligned
    nf_pad = _round_up(n1_pad + n2, 128)

    wf = jnp.zeros((C, nf_pad), jnp.bfloat16)
    wf = wf.at[:, :n1].set(w1.astype(jnp.bfloat16))
    wf = wf.at[:, n1_pad:n1_pad + n2].set(w2.astype(jnp.bfloat16))
    bf = jnp.zeros((1, nf_pad), jnp.float32)
    bf = bf.at[0, :n1].set(b1.astype(jnp.float32))
    bf = bf.at[0, n1_pad:n1_pad + n2].set(b2.astype(jnp.float32))

    def forward(feats_nchw):
        B, Cf, H, W = feats_nchw.shape
        assert Cf == C, "feature channels must match the classifier in_features"

        bblk = _pick_batch_block(B, C, H, W, nf_pad, vmem_budget_bytes)
        grid = (B // bblk,)
        est = _vmem_estimate(bblk, C, H, W, nf_pad)
        vmem_limit = int(min(48 << 20, max(32 << 20, 2 * est)))

        grid_spec = pltpu.PrefetchScalarGridSpec(
            num_scalar_prefetch=0,
            grid=grid,
            in_specs=[
                # raw NCHW feature chunk; last two dims are the full (H, W)
                pl.BlockSpec((bblk, C, H, W), lambda i: (i, 0, 0, 0)),
                # fused weight / bias: constant block index -> fetched once
                pl.BlockSpec((C, nf_pad), lambda i: (0, 0)),
                pl.BlockSpec((1, nf_pad), lambda i: (0, 0)),
            ],
            out_specs=pl.BlockSpec((bblk, nf_pad), lambda i: (i, 0)),
        )

        fused = pl.pallas_call(
            _head_kernel,
            out_shape=jax.ShapeDtypeStruct((B, nf_pad), jnp.float32),
            grid_spec=grid_spec,
            compiler_params=pltpu.CompilerParams(
                dimension_semantics=("parallel",),
                vmem_limit_bytes=vmem_limit,
            ),
        )(feats_nchw.astype(jnp.float32), wf, bf)

        # Both slices start on lane boundaries (0 and n1_pad).
        return fused[:, :n1], fused[:, n1_pad:n1_pad + n2]

    return jax.jit(forward)


def _reference(feats_nchw, w1, b1, w2, b2):
    # Pure-JAX f32 reference mirroring the PyTorch forward (eval mode).
    x = jnp.mean(feats_nchw, axis=2)                 # (B, C, W)
    x = jnp.transpose(x, (0, 2, 1))                  # (B, W, C)
    x1 = x @ w1 + b1                                 # (B, W, N1)
    x2 = x @ w2 + b2                                 # (B, W, N2)
    o1 = jnp.sum(x1, axis=1) + 0.5 * jnp.max(x1, axis=1)
    o2 = jnp.sum(x2, axis=1) + 0.5 * jnp.max(x2, axis=1)
    return o1, o2


if __name__ == "__main__":
    # Small, module-consistent shapes:
    #   backbone feature map: B=2, num_features C=32, spatial H=W=8
    #   clf -> 398 classes, clf2 -> 146 classes (as in the module)
    B, C, H, W = 2, 32, 8, 8
    N1, N2 = 398, 146

    key = jax.random.PRNGKey(0)
    k_f, k_w1, k_b1, k_w2, k_b2 = jax.random.split(key, 5)

    feats = jax.random.normal(k_f, (B, C, H, W), dtype=jnp.float32)
    # torch nn.Linear stores weight as (out, in); we pass the transposed (in, out).
    w1 = jax.random.normal(k_w1, (C, N1), dtype=jnp.float32) * 0.05
    b1 = jax.random.normal(k_b1, (N1,), dtype=jnp.float32) * 0.05
    w2 = jax.random.normal(k_w2, (C, N2), dtype=jnp.float32) * 0.05
    b2 = jax.random.normal(k_b2, (N2,), dtype=jnp.float32) * 0.05

    head = make_sed_attn_cnn11_head(w1, b1, w2, b2)   # prep hoisted, runs once
    out1, out2 = jax.block_until_ready(head(feats))
    ref1, ref2 = _reference(feats, w1, b1, w2, b2)

    assert out1.shape == (B, N1) and out2.shape == (B, N2)
    # Tolerance loosened vs the pure-f32 reference because MXU operands are bf16.
    assert jnp.allclose(out1, ref1, atol=5e-2, rtol=5e-2)
    assert jnp.allclose(out2, ref2, atol=5e-2, rtol=5e-2)
    print("KERNEL_OK")
</pallas_src>

<mosaic_0001>
module attributes {stable_mosaic.version = 11 : i64} {
  func.func @_head_kernel(%arg0: i32, %arg1: memref<2x32x8x8xf32, #tpu.memory_space<vmem>>, %arg2: memref<32x768xbf16, #tpu.memory_space<vmem>>, %arg3: memref<1x768xf32, #tpu.memory_space<vmem>>, %arg4: memref<2x768xf32, #tpu.memory_space<vmem>>) attributes {dimension_semantics = [#tpu.dimension_semantics<parallel>], iteration_bounds = array<i64: 1>, scalar_prefetch = 0 : i64, scratch_operands = 0 : i64, tpu.core_type = #tpu.core_type<tc>, window_params = [{transform_indices = @transform_0, window_bounds = array<i64: 2, 32, 8, 8>}, {pipeline_mode = #tpu.pipeline_mode<synchronous>, transform_indices = @transform_1, window_bounds = array<i64: 32, 768>}, {pipeline_mode = #tpu.pipeline_mode<synchronous>, transform_indices = @transform_2, window_bounds = array<i64: 1, 768>}, {transform_indices = @transform_3, window_bounds = array<i64: 2, 768>}]} {
    %c0 = arith.constant 0 : index
    %c0_0 = arith.constant 0 : index
    %c0_1 = arith.constant 0 : index
    %c0_2 = arith.constant 0 : index
    %0 = vector.load %arg1[%c0, %c0_0, %c0_1, %c0_2] : memref<2x32x8x8xf32, #tpu.memory_space<vmem>>, vector<2x32x8x8xf32>
    %cst = arith.constant dense<0.000000e+00> : vector<2x32x8xf32>
    %1 = vector.multi_reduction <add>, %0, %cst [2] : vector<2x32x8x8xf32> to vector<2x32x8xf32>
    %cst_3 = arith.constant 1.250000e-01 : f32
    %2 = vector.broadcast %cst_3 : f32 to vector<2x32x8xf32>
    %3 = arith.mulf %1, %2 : vector<2x32x8xf32>
    %4 = arith.truncf %3 : vector<2x32x8xf32> to vector<2x32x8xbf16>
    %c0_4 = arith.constant 0 : index
    %c0_5 = arith.constant 0 : index
    %5 = vector.load %arg2[%c0_4, %c0_5] : memref<32x768xbf16, #tpu.memory_space<vmem>>, vector<32x768xbf16>
    %6 = vector.extract_strided_slice %4 {offsets = [0, 0, 0], sizes = [1, 32, 8], strides = [1, 1, 1]} : vector<2x32x8xbf16> to vector<1x32x8xbf16>
    %7 = vector.shape_cast %6 : vector<1x32x8xbf16> to vector<32x8xbf16>
    %cst_6 = arith.constant dense<0.000000e+00> : vector<8x768xf32>
    %8 = tpu.matmul %7, %5, %cst_6 {dimension_numbers = #tpu.dot_dimension_numbers<[0], [0], [1], [1], [0, 1, 1, 1], [], []>} : vector<32x8xbf16>, vector<32x768xbf16>, vector<8x768xf32> -> vector<8x768xf32>
    %cst_7 = arith.constant dense<0.000000e+00> : vector<768xf32>
    %9 = vector.multi_reduction <add>, %8, %cst_7 [0] : vector<8x768xf32> to vector<768xf32>
    %10 = vector.shape_cast %9 : vector<768xf32> to vector<1x768xf32>
    %cst_8 = arith.constant dense<0xFF800000> : vector<768xf32>
    %11 = vector.multi_reduction <maximumf>, %8, %cst_8 [0] : vector<8x768xf32> to vector<768xf32>
    %12 = vector.shape_cast %11 : vector<768xf32> to vector<1x768xf32>
    %cst_9 = arith.constant 5.000000e-01 : f32
    %13 = vector.broadcast %cst_9 : f32 to vector<1x768xf32>
    %14 = arith.mulf %13, %12 : vector<1x768xf32>
    %15 = arith.addf %10, %14 : vector<1x768xf32>
    %16 = vector.extract_strided_slice %4 {offsets = [1, 0, 0], sizes = [1, 32, 8], strides = [1, 1, 1]} : vector<2x32x8xbf16> to vector<1x32x8xbf16>
    %17 = vector.shape_cast %16 : vector<1x32x8xbf16> to vector<32x8xbf16>
    %cst_10 = arith.constant dense<0.000000e+00> : vector<8x768xf32>
    %18 = tpu.matmul %17, %5, %cst_10 {dimension_numbers = #tpu.dot_dimension_numbers<[0], [0], [1], [1], [0, 1, 1, 1], [], []>} : vector<32x8xbf16>, vector<32x768xbf16>, vector<8x768xf32> -> vector<8x768xf32>
    %cst_11 = arith.constant dense<0.000000e+00> : vector<768xf32>
    %19 = vector.multi_reduction <add>, %18, %cst_11 [0] : vector<8x768xf32> to vector<768xf32>
    %20 = vector.shape_cast %19 : vector<768xf32> to vector<1x768xf32>
    %cst_12 = arith.constant dense<0xFF800000> : vector<768xf32>
    %21 = vector.multi_reduction <maximumf>, %18, %cst_12 [0] : vector<8x768xf32> to vector<768xf32>
    %22 = vector.shape_cast %21 : vector<768xf32> to vector<1x768xf32>
    %cst_13 = arith.constant 5.000000e-01 : f32
    %23 = vector.broadcast %cst_13 : f32 to vector<1x768xf32>
    %24 = arith.mulf %23, %22 : vector<1x768xf32>
    %25 = arith.addf %20, %24 : vector<1x768xf32>
    %26 = tpu.concatenate %15, %25 in 0 : vector<1x768xf32>, vector<1x768xf32> -> vector<2x768xf32>
    %c0_14 = arith.constant 0 : index
    %c0_15 = arith.constant 0 : index
    %27 = vector.load %arg3[%c0_14, %c0_15] : memref<1x768xf32, #tpu.memory_space<vmem>>, vector<1x768xf32>
    %cst_16 = arith.constant 8.500000e+00 : f32
    %28 = vector.broadcast %cst_16 : f32 to vector<1x768xf32>
    %29 = arith.mulf %28, %27 : vector<1x768xf32>
    %30 = vector.broadcast %29 : vector<1x768xf32> to vector<2x768xf32>
    %31 = arith.addf %26, %30 : vector<2x768xf32>
    %c0_17 = arith.constant 0 : index
    %c0_18 = arith.constant 0 : index
    %32 = vector.load %arg4[%c0_17, %c0_18] : memref<2x768xf32, #tpu.memory_space<vmem>>, vector<2x768xf32>
    tpu.vector_store %arg4[%c0_17, %c0_18], %31 {strides = array<i32>} : memref<2x768xf32, #tpu.memory_space<vmem>>, vector<2x768xf32>,
    return
  }
  func.func @transform_0(%arg0: i32) -> (i32, i32, i32, i32) {
    %c0_i32 = arith.constant 0 : i32
    %c0_i32_0 = arith.constant 0 : i32
    %c0_i32_1 = arith.constant 0 : i32
    %c0_i32_2 = arith.constant 0 : i32
    return %arg0, %c0_i32, %c0_i32_0, %c0_i32_1 : i32, i32, i32, i32
  }
  func.func @transform_1(%arg0: i32) -> (i32, i32) {
    %c0_i32 = arith.constant 0 : i32
    %c0_i32_0 = arith.constant 0 : i32
    %c0_i32_1 = arith.constant 0 : i32
    return %c0_i32, %c0_i32_0 : i32, i32
  }
  func.func @transform_2(%arg0: i32) -> (i32, i32) {
    %c0_i32 = arith.constant 0 : i32
    %c0_i32_0 = arith.constant 0 : i32
    %c0_i32_1 = arith.constant 0 : i32
    return %c0_i32, %c0_i32_0 : i32, i32
  }
  func.func @transform_3(%arg0: i32) -> (i32, i32) {
    %c0_i32 = arith.constant 0 : i32
    %c0_i32_0 = arith.constant 0 : i32
    return %arg0, %c0_i32 : i32, i32
  }
}

</mosaic_0001>

<bundles_post_ra>
// kernel: forward.1
= control target key start
LH: loop header
LB: loop body
LE: loop exit
PB: predicated region body
PF: predicated region fallthrough
CT: control target
= control target key end

     0   :  { %vm79_vm0 = vcmask 64512   ;;  %vm732_vm1 = vcmask 1041409   ;;  %vm734_vm2 = vcmask 1042434   ;;  %vm736_vm3 = vcmask 1043459   ;;  %s2037_s0 = inlined_call_operand.vmem [shape: f32[2,32,8,8], index: 0, kind: input, shape index: {}]   ;;  %s2038_s1 = inlined_call_operand.vmem [shape: bf16[32,768], index: 1, kind: input, shape index: {}]   ;;  %s2039_s2 = inlined_call_operand.vmem [shape: f32[1,768], index: 2, kind: input, shape index: {}]   ;;  %s2040_s3 = inlined_call_operand.vmem [shape: f32[2,768], index: 3, kind: output, shape index: {}]  }
   0x1   :  { %v15_v0 = vld [vmem:[%s2037_s0] sm:$0xff]  ;;  %v16_v1 = vld [vmem:[%s2037_s0 + $0x8] sm:$0xff]  ;;  %v17_v2 = vld [vmem:[%s2037_s0 + $0x10] sm:$0xff]  ;;  %vm738_vm4 = vcmask 1044484   ;;  %vm740_vm5 = vcmask 1045509   ;;  %vm742_vm6 = vcmask 1046534  }
   0x2   :  { %v18_v3 = vld [vmem:[%s2037_s0 + $0x18] sm:$0xff]  ;;  %v19_v4 = vld [vmem:[%s2037_s0 + $0x20] sm:$0xff]  ;;  %v20_v5 = vld [vmem:[%s2037_s0 + $0x28] sm:$0xff]  ;;  %v80_v6 = vsel %vm79_vm0, %v15_v0, 0.0  ;;  %v87_v7 = vsel %vm79_vm0, %v16_v1, 0.0  ;;  %v94_v8 = vsel %vm79_vm0, %v17_v2, 0.0 }
   0x3   :  { %v21_v9 = vld [vmem:[%s2037_s0 + $0x30] sm:$0xff]  ;;  %v22_v10 = vld [vmem:[%s2037_s0 + $0x38] sm:$0xff]  ;;  %v81_v11 = vrot.slane %v80_v6, 4  ;;  %v88_v12 = vrot.slane %v87_v7, 4  ;;  %v95_v13 = vrot.slane %v94_v8, 4  ;;  %v101_v14 = vsel %vm79_vm0, %v18_v3, 0.0 }
   0x4   :  { %v108_v15 = vsel %vm79_vm0, %v19_v4, 0.0  ;;  %v115_v16 = vsel %vm79_vm0, %v20_v5, 0.0  ;;  %v102_v20 = vrot.slane %v101_v14, 4  ;;  %v122_v23 = vsel %vm79_vm0, %v21_v9, 0.0  ;;  %v23_v45 = vld [vmem:[%s2037_s0 + $0x40] sm:$0xff]  ;;  %v24_v46 = vld [vmem:[%s2037_s0 + $0x48] sm:$0xff] }
   0x5   :  { %v82_v17 = vadd.f32 %v81_v11, %v80_v6  ;;  %v89_v18 = vadd.f32 %v88_v12, %v87_v7  ;;  %v96_v19 = vadd.f32 %v95_v13, %v94_v8  ;;  %v109_v21 = vrot.slane %v108_v15, 4  ;;  %v25_v47 = vld [vmem:[%s2037_s0 + $0x50] sm:$0xff]  ;;  %v26_v56 = vld [vmem:[%s2037_s0 + $0x58] sm:$0xff]  ;;  %v27_v61 = vld [vmem:[%s2037_s0 + $0x60] sm:$0xff] }
   0x6   :  { %v116_v22 = vrot.slane %v115_v16, 4  ;;  %v129_v24 = vsel %vm79_vm0, %v22_v10, 0.0  ;;  %v103_v28 = vadd.f32 %v102_v20, %v101_v14  ;;  %v123_v31 = vrot.slane %v122_v23, 4  ;;  %v28_v2 = vld [vmem:[%s2037_s0 + $0x68] sm:$0xff]  ;;  %v29_v7 = vld [vmem:[%s2037_s0 + $0x70] sm:$0xff]  ;;  %v30_v8 = vld [vmem:[%s2037_s0 + $0x78] sm:$0xff] }
   0x7   :  { %v83_v25 = vrot.slane %v82_v17, 2  ;;  %v90_v26 = vrot.slane %v89_v18, 2  ;;  %v97_v27 = vrot.slane %v96_v19, 2  ;;  %v110_v29 = vadd.f32 %v109_v21, %v108_v15 }
   0x8   :  { %v117_v30 = vadd.f32 %v116_v22, %v115_v16  ;;  %v130_v32 = vrot.slane %v129_v24, 4  ;;  %v104_v36 = vrot.slane %v103_v28, 2  ;;  %v124_v39 = vadd.f32 %v123_v31, %v122_v23 }
   0x9   :  { %v84_v33 = vadd.f32 %v83_v25, %v82_v17  ;;  %v91_v34 = vadd.f32 %v90_v26, %v89_v18  ;;  %v98_v35 = vadd.f32 %v97_v27, %v96_v19  ;;  %v111_v37 = vrot.slane %v110_v29, 2 }
   0xa   :  { %v118_v38 = vrot.slane %v117_v30, 2  ;;  %v131_v40 = vadd.f32 %v130_v32, %v129_v24  ;;  %v105_v44 = vadd.f32 %v104_v36, %v103_v28  ;;  %v125_v50 = vrot.slane %v124_v39, 2 }
   0xb   :  { %v85_v41 = vrot.slane %v84_v33, 1  ;;  %v92_v42 = vrot.slane %v91_v34, 1  ;;  %v99_v43 = vrot.slane %v98_v35, 1  ;;  %v112_v48 = vadd.f32 %v111_v37, %v110_v29 }
   0xc   :  { %v119_v49 = vadd.f32 %v118_v38, %v117_v30  ;;  %v132_v51 = vrot.slane %v131_v40, 2  ;;  %v106_v55 = vrot.slane %v105_v44, 1  ;;  %v126_v59 = vadd.f32 %v125_v50, %v124_v39 }
   0xd   :  { %v1574_v52 = vadd.f32 %v85_v41, %v84_v33  ;;  %v1576_v53 = vadd.f32 %v92_v42, %v91_v34  ;;  %v1578_v54 = vadd.f32 %v99_v43, %v98_v35  ;;  %v113_v57 = vrot.slane %v112_v48, 1 }
   0xe   :  { %v120_v58 = vrot.slane %v119_v49, 1  ;;  %v133_v60 = vadd.f32 %v132_v51, %v131_v40  ;;  %v1586_v62 = vadd.f32 %v106_v55, %v105_v44  ;;  %v136_v63 = vsel %vm79_vm0, %v23_v45, 0.0 }
   0xf   :  { %v143_v0 = vsel %vm79_vm0, %v24_v46, 0.0  ;;  %v150_v1 = vsel %vm79_vm0, %v25_v47, 0.0  ;;  %v114_v3 = vadd.f32 %v113_v57, %v112_v48  ;;  %v127_v5 = vrot.slane %v126_v59, 1 }
  0x10   :  { %v121_v4 = vadd.f32 %v120_v58, %v119_v49  ;;  %v134_v6 = vrot.slane %v133_v60, 1  ;;  %v137_v9 = vrot.slane %v136_v63, 4  ;;  %v144_v10 = vrot.slane %v143_v0, 4 }
  0x11   :  { %v151_v11 = vrot.slane %v150_v1, 4  ;;  %v157_v12 = vsel %vm79_vm0, %v26_v56, 0.0  ;;  %v128_v13 = vadd.f32 %v127_v5, %v126_v59  ;;  %v164_v16 = vsel %vm79_vm0, %v27_v61, 0.0 }
  0x12   :  { %v135_v14 = vadd.f32 %v134_v6, %v133_v60  ;;  %v158_v15 = vrot.slane %v157_v12, 4  ;;  %v138_v17 = vadd.f32 %v137_v9, %v136_v63  ;;  %v145_v18 = vadd.f32 %v144_v10, %v143_v0 }
  0x13   :  { %v152_v19 = vadd.f32 %v151_v11, %v150_v1  ;;  %v165_v20 = vrot.slane %v164_v16, 4  ;;  %v171_v22 = vsel %vm79_vm0, %v28_v2, 0.0  ;;  %v178_v23 = vsel %vm79_vm0, %v29_v7, 0.0 }
  0x14   :  { %v159_v21 = vadd.f32 %v158_v15, %v157_v12  ;;  %v185_v24 = vsel %vm79_vm0, %v30_v8, 0.0  ;;  %v139_v25 = vrot.slane %v138_v17, 2  ;;  %v146_v26 = vrot.slane %v145_v18, 2 }
  0x15   :  { %v153_v27 = vrot.slane %v152_v19, 2  ;;  %v166_v28 = vadd.f32 %v165_v20, %v164_v16  ;;  %v172_v30 = vrot.slane %v171_v22, 4  ;;  %v179_v31 = vrot.slane %v178_v23, 4 }
  0x16   :  { %v160_v29 = vrot.slane %v159_v21, 2  ;;  %v186_v32 = vrot.slane %v185_v24, 4  ;;  %v140_v33 = vadd.f32 %v139_v25, %v138_v17  ;;  %v147_v34 = vadd.f32 %v146_v26, %v145_v18 }
  0x17   :  { %v154_v35 = vadd.f32 %v153_v27, %v152_v19  ;;  %v167_v36 = vrot.slane %v166_v28, 2  ;;  %v173_v38 = vadd.f32 %v172_v30, %v171_v22  ;;  %v180_v39 = vadd.f32 %v179_v31, %v178_v23 }
  0x18   :  { %v161_v37 = vadd.f32 %v160_v29, %v159_v21  ;;  %v187_v40 = vadd.f32 %v186_v32, %v185_v24  ;;  %v141_v41 = vrot.slane %v140_v33, 1  ;;  %v148_v42 = vrot.slane %v147_v34, 1 }
  0x19   :  { %v155_v43 = vrot.slane %v154_v35, 1  ;;  %v168_v44 = vadd.f32 %v167_v36, %v166_v28  ;;  %v174_v46 = vrot.slane %v173_v38, 2  ;;  %v181_v47 = vrot.slane %v180_v39, 2 }
  0x1a   :  { %v162_v45 = vrot.slane %v161_v37, 1  ;;  %v188_v48 = vrot.slane %v187_v40, 2  ;;  %v142_v49 = vadd.f32 %v141_v41, %v140_v33  ;;  %v149_v50 = vadd.f32 %v148_v42, %v147_v34  ;;  %v31_v41 = vld [vmem:[%s2037_s0 + $0x80] sm:$0xff] }
  0x1b   :  { %v156_v51 = vadd.f32 %v155_v43, %v154_v35  ;;  %v169_v55 = vrot.slane %v168_v44, 1  ;;  %v175_v57 = vadd.f32 %v174_v46, %v173_v38  ;;  %v182_v58 = vadd.f32 %v181_v47, %v180_v39  ;;  %v32_v46 = vld [vmem:[%s2037_s0 + $0x88] sm:$0xff] }
  0x1c   :  { %v163_v56 = vadd.f32 %v162_v45, %v161_v37  ;;  %v189_v59 = vadd.f32 %v188_v48, %v187_v40  ;;  %v528_v61 = vmul.f32 0.125, %v1574_v52  ;;  %v529_v63 = vmul.f32 0.125, %v1576_v53 }
  0x1d   :  { %v170_v60 = vadd.f32 %v169_v55, %v168_v44  ;;  %v530_v0 = vmul.f32 0.125, %v1578_v54  ;;  %v176_v1 = vrot.slane %v175_v57, 1  ;;  %v183_v2 = vrot.slane %v182_v58, 1 }
  0x1e   :  { %v190_v5 = vrot.slane %v189_v59, 1  ;;  %v531_v6 = vmul.f32 0.125, %v1586_v62  ;;  %v532_v7 = vmul.f32 0.125, %v114_v3  ;;  %v533_v8 = vmul.f32 0.125, %v121_v4 }
  0x1f   :  { %v534_v9 = vmul.f32 0.125, %v128_v13  ;;  %v535_v10 = vmul.f32 0.125, %v135_v14  ;;  %v177_v11 = vadd.f32 %v176_v1, %v175_v57  ;;  %v184_v12 = vadd.f32 %v183_v2, %v182_v58 }
  0x20   :  { %v191_v15 = vadd.f32 %v190_v5, %v189_v59  ;;  %v536_v16 = vmul.f32 0.125, %v142_v49  ;;  %v537_v52 = vmul.f32 0.125, %v149_v50  ;;  %v538_v17 = vmul.f32 0.125, %v156_v51  ;;  %v33_v51 = vld [vmem:[%s2037_s0 + $0x90] sm:$0xff] }
  0x21   :  { %v539_v53 = vmul.f32 0.125, %v163_v56  ;;  %v540_v18 = vmul.f32 0.125, %v170_v60  ;;  %v541_v54 = vmul.f32 0.125, %v177_v11  ;;  %v542_v19 = vmul.f32 0.125, %v184_v12  ;;  %v34_v60 = vld [vmem:[%s2037_s0 + $0x98] sm:$0xff] }
  0x22   :  { %v543_v20 = vmul.f32 0.125, %v191_v15  ;;  %v592_v21 = vpack.c.bf16 %v528_v61, %v528_v61  ;;  %v593_v62 = vpack.c.bf16 %v529_v63, %v529_v63  ;;  %v594_v3 = vpack.c.bf16 %v530_v0, %v530_v0 }
  0x23   :  { %v595_v4 = vpack.c.bf16 %v531_v6, %v531_v6  ;;  %v596_v13 = vpack.c.bf16 %v532_v7, %v532_v7  ;;  %v597_v14 = vpack.c.bf16 %v533_v8, %v533_v8  ;;  %v598_v22 = vpack.c.bf16 %v534_v9, %v534_v9  ;;  %v35_v8 = vld [vmem:[%s2037_s0 + $0xa0] sm:$0xff] }
  0x24   :  { %v599_v23 = vpack.c.bf16 %v535_v10, %v535_v10  ;;  %v600_v24 = vpack.c.bf16 %v536_v16, %v536_v16  ;;  %v601_v25 = vpack.c.bf16 %v537_v52, %v537_v52  ;;  %v602_v26 = vpack.c.bf16 %v538_v17, %v538_v17 }
  0x25   :  { %v603_v27 = vpack.c.bf16 %v539_v53, %v539_v53  ;;  %v604_v28 = vpack.c.bf16 %v540_v18, %v540_v18  ;;  %v605_v29 = vpack.c.bf16 %v541_v54, %v541_v54  ;;  %v606_v30 = vpack.c.bf16 %v542_v19, %v542_v19  ;;  %v36_v53 = vld [vmem:[%s2037_s0 + $0xa8] sm:$0xff]  ;;  %v37_v18 = vld [vmem:[%s2037_s0 + $0xb0] sm:$0xff] }
  0x26   :  { %v607_v31 = vpack.c.bf16 %v543_v20, %v543_v20  ;;  %v700_v32 = vunpack.c.l.b16 %v592_v21  ;;  %v701_v33 = vunpack.c.l.b16 %v593_v62  ;;  %v702_v34 = vunpack.c.l.b16 %v594_v3 }
  0x27   :  { %v703_v35 = vunpack.c.l.b16 %v595_v4  ;;  %v704_v36 = vunpack.c.l.b16 %v596_v13  ;;  %v705_v37 = vunpack.c.l.b16 %v597_v14  ;;  %v706_v38 = vunpack.c.l.b16 %v598_v22  ;;  %v38_v13 = vld [vmem:[%s2037_s0 + $0xb8] sm:$0xff] }
  0x28   :  { %v707_v39 = vunpack.c.l.b16 %v599_v23  ;;  %v708_v40 = vunpack.c.l.b16 %v600_v24  ;;  %v709_v42 = vunpack.c.l.b16 %v601_v25  ;;  %v710_v43 = vunpack.c.l.b16 %v602_v26 }
  0x29   :  { %v711_v44 = vunpack.c.l.b16 %v603_v27  ;;  %v712_v45 = vunpack.c.l.b16 %v604_v28  ;;  %v713_v47 = vunpack.c.l.b16 %v605_v29  ;;  %v714_v48 = vunpack.c.l.b16 %v606_v30 }
  0x2a   :  { %v715_v49 = vunpack.c.l.b16 %v607_v31  ;;  %v733_v50 = vsel %vm732_vm1, %v701_v33, %v700_v32  ;;  %vm744_vm7 = vcmask 1047559   ;;  %v746_v56 = vsel %vm732_vm1, %v709_v42, %v708_v40  ;;  %v39_v32 = vld [vmem:[%s2037_s0 + $0xc0] sm:$0xff]  ;;  %v41_v42 = vld [vmem:[%s2037_s0 + $0xd0] sm:$0xff] }
  0x2b   :  { %v735_v55 = vsel %vm734_vm2, %v702_v34, %v733_v50  ;;  %v192_v57 = vsel %vm79_vm0, %v31_v41, 0.0  ;;  %v747_v59 = vsel %vm734_vm2, %v710_v43, %v746_v56  ;;  %v199_v63 = vsel %vm79_vm0, %v32_v46, 0.0  ;;  %v40_v41 = vld [vmem:[%s2037_s0 + $0xc8] sm:$0xff] }
  0x2c   :  { %v737_v58 = vsel %vm736_vm3, %v703_v35, %v735_v55  ;;  %v193_v61 = vrot.slane %v192_v57, 4  ;;  %v748_v1 = vsel %vm736_vm3, %v711_v44, %v747_v59  ;;  %v200_v2 = vrot.slane %v199_v63, 4  ;;  %v1486_v55 = vld [vmem:[%s2038_s1 + $0x34] ss:$24 sps:$4 sm:$0xff]  }
  0x2d   :  { %v739_v0 = vsel %vm738_vm4, %v704_v36, %v737_v58  ;;  %v206_v5 = vsel %vm79_vm0, %v33_v51, 0.0  ;;  %v749_v7 = vsel %vm738_vm4, %v712_v45, %v748_v1  ;;  %v213_v16 = vsel %vm79_vm0, %v34_v60, 0.0  ;;  %v1488_v60 = vld [vmem:[%s2038_s1 + $0x30] ss:$24 sps:$4 sm:$0xff]   ;;  %863 = vmatprep.subr.bf16.mxu0 %v1486_v55 }
  0x2e   :  { %v741_v6 = vsel %vm740_vm5, %v705_v37, %v739_v0  ;;  %v194_v9 = vadd.f32 %v193_v61, %v192_v57  ;;  %v207_v10 = vrot.slane %v206_v5, 4  ;;  %v750_v12 = vsel %vm740_vm5, %v713_v47, %v749_v7  ;;  %v42_v47 = vld [vmem:[%s2037_s0 + $0xd8] sm:$0xff]  ;;  %v43_v61 = vld [vmem:[%s2037_s0 + $0xe0] sm:$0xff]  ;;  %864 = vmatpush1.bf16.msra.mxu0 %v1488_v60 }
  0x2f   :  { %v743_v11 = vsel %vm742_vm6, %v706_v38, %v741_v6  ;;  %v201_v15 = vadd.f32 %v200_v2, %v199_v63  ;;  %v751_v17 = vsel %vm742_vm6, %v714_v48, %v750_v12  ;;  %v214_v62 = vrot.slane %v213_v16, 4  ;;  %v45_v12 = vld [vmem:[%s2037_s0 + $0xf0] sm:$0xff] }
  0x30   :  { %v745_v52 = vsel %vm744_vm7, %v707_v39, %v743_v11  ;;  %v195_v54 = vrot.slane %v194_v9, 2  ;;  %v208_v19 = vadd.f32 %v207_v10, %v206_v5  ;;  %v752_v20 = vsel %vm744_vm7, %v715_v49, %v751_v17  ;;  %v1489_v5 = vld [vmem:[%s2038_s1 + $0x3c] ss:$24 sps:$4 sm:$0xff]   ;;  %v1491_v10 = vld [vmem:[%s2038_s1 + $0x38] ss:$24 sps:$4 sm:$0xff]   ;;  %v44_v11 = vld [vmem:[%s2037_s0 + $0xe8] sm:$0xff] }
  0x31   :  { %v202_v21 = vrot.slane %v201_v15, 2  ;;  %v220_v3 = vsel %vm79_vm0, %v35_v8, 0.0  ;;  %v767_v4 = vpack.c.b16 %v752_v20, %v745_v52  ;;  %v215_v25 = vadd.f32 %v214_v62, %v213_v16  ;;  %904 = vmatprep.subr.bf16.mxu1 %v1489_v5 }
  0x32   :  { %v196_v14 = vadd.f32 %v195_v54, %v194_v9  ;;  %v209_v22 = vrot.slane %v208_v19, 2  ;;  %v221_v23 = vrot.slane %v220_v3, 4  ;;  %v227_v26 = vsel %vm79_vm0, %v36_v53, 0.0  ;;  %v1492_v53 = vld [vmem:[%s2038_s1 + $0x4] ss:$24 sps:$4 sm:$0xff]   ;;  %905 = vmatpush1.bf16.msra.mxu1 %v1491_v10 }
  0x33   :  { %v203_v24 = vadd.f32 %v202_v21, %v201_v15  ;;  %v234_v27 = vsel %vm79_vm0, %v37_v18, 0.0  ;;  %771 = vxpose.xlu0.c.b16.start [1/2] (short) (narrow) %v767_v4, 16  ;;  %v228_v31 = vrot.slane %v227_v26, 4  ;;  %v216_v34 = vrot.slane %v215_v25, 2  ;;  %v1494_v21 = vld [vmem:[%s2038_s1] ss:$24 sps:$4 sm:$0xff]   ;;  %865 = vmatprep.subr.bf16.mxu0 %v1492_v53 }
  0x34   :  { %v197_v28 = vrot.slane %v196_v14, 1  ;;  %v210_v29 = vadd.f32 %v209_v22, %v208_v19  ;;  %v222_v30 = vadd.f32 %v221_v23, %v220_v3  ;;  %v235_v35 = vrot.slane %v234_v27, 4  ;;  %v1497_v22 = vld [vmem:[%s2038_s1 + $0x8] ss:$24 sps:$4 sm:$0xff]   ;;  %v46_v23 = vld [vmem:[%s2037_s0 + $0xf8] sm:$0xff]  ;;  %866 = vmatpush1.bf16.msra.mxu0 %v1494_v21 }
  0x35   :  { %v204_v33 = vrot.slane %v203_v24, 1  ;;  %v241_v36 = vsel %vm79_vm0, %v38_v13, 0.0  ;;  %v229_v40 = vadd.f32 %v228_v31, %v227_v26  ;;  %v217_v44 = vadd.f32 %v216_v34, %v215_v25 }
  0x36   :  { %v1658_v37 = vadd.f32 %v197_v28, %v196_v14  ;;  %v211_v38 = vrot.slane %v210_v29, 1  ;;  %v223_v39 = vrot.slane %v222_v30, 2  ;;  %v236_v45 = vadd.f32 %v235_v35, %v234_v27  ;;  %v1495_v14 = vld [vmem:[%s2038_s1 + $0xc] ss:$24 sps:$4 sm:$0xff]  }
  0x37   :  { %v1666_v43 = vadd.f32 %v204_v33, %v203_v24  ;;  %v242_v46 = vrot.slane %v241_v36, 4  ;;  %v230_v50 = vrot.slane %v229_v40, 2  ;;  %v248_v51 = vsel %vm79_vm0, %v39_v32, 0.0  ;;  %906 = vmatprep.subr.bf16.mxu1 %v1495_v14  ;;  %v1721_v32 = vld [vmem:[%s2038_s1 + $0x44] ss:$24 sps:$4 sm:$0xff]  }
  0x38   :  { %v1671_v48 = vadd.f32 %v211_v38, %v210_v29  ;;  %v224_v49 = vadd.f32 %v223_v39, %v222_v30  ;;  %v218_v56 = vrot.slane %v217_v44, 1  ;;  %v237_v57 = vrot.slane %v236_v45, 2  ;;  %907 = vmatpush1.bf16.msra.mxu1 %v1497_v22  ;;  %945 = vmatprep.subr.bf16.mxu0 %v1721_v32 }
  0x39   :  { %v243_v58 = vadd.f32 %v242_v46, %v241_v36  ;;  %v249_v59 = vrot.slane %v248_v51, 4  ;;  %v231_v0 = vadd.f32 %v230_v50, %v229_v40  ;;  %v255_v1 = vsel %vm79_vm0, %v40_v41, 0.0  ;;  %1185 = vmatprep.subr.bf16.mxu1 %v1486_v55 }
  0x3a   :  { %v225_v63 = vrot.slane %v224_v49, 1  ;;  %v262_v2 = vsel %vm79_vm0, %v41_v42, 0.0  ;;  %v1688_v6 = vadd.f32 %v218_v56, %v217_v44  ;;  %v238_v7 = vadd.f32 %v237_v57, %v236_v45 }
  0x3b   :  { %v244_v8 = vrot.slane %v243_v58, 2  ;;  %v250_v9 = vadd.f32 %v249_v59, %v248_v51  ;;  %v232_v16 = vrot.slane %v231_v0, 1  ;;  %v256_v52 = vrot.slane %v255_v1, 4 }
  0x3c   :  { %v1699_v15 = vadd.f32 %v225_v63, %v224_v49  ;;  %v263_v17 = vrot.slane %v262_v2, 4  ;;  %v239_v18 = vrot.slane %v238_v7, 1  ;;  %v269_v20 = vsel %vm79_vm0, %v42_v47, 0.0 }
  0x3d   :  { %v245_v54 = vadd.f32 %v244_v8, %v243_v58  ;;  %v251_v19 = vrot.slane %v250_v9, 2  ;;  %v233_v62 = vadd.f32 %v232_v16, %v231_v0  ;;  %v257_v3 = vadd.f32 %v256_v52, %v255_v1 }
  0x3e   :  { %v264_v4 = vadd.f32 %v263_v17, %v262_v2  ;;  %v270_v13 = vrot.slane %v269_v20, 4  ;;  %v240_v24 = vadd.f32 %v239_v18, %v238_v7  ;;  %v276_v27 = vsel %vm79_vm0, %v43_v61, 0.0 }
  0x3f   :  { %v246_v25 = vrot.slane %v245_v54, 1  ;;  %v252_v26 = vadd.f32 %v251_v19, %v250_v9  ;;  %v258_v28 = vrot.slane %v257_v3, 2  ;;  %v277_v31 = vrot.slane %v276_v27, 4 }
  0x40   :  { %v265_v29 = vrot.slane %v264_v4, 2  ;;  %v271_v30 = vadd.f32 %v270_v13, %v269_v20  ;;  %v283_v35 = vsel %vm79_vm0, %v44_v11, 0.0  ;;  %v290_v36 = vsel %vm79_vm0, %v45_v12, 0.0 }
  0x41   :  { %v247_v33 = vadd.f32 %v246_v25, %v245_v54  ;;  %v253_v34 = vrot.slane %v252_v26, 1  ;;  %v259_v38 = vadd.f32 %v258_v28, %v257_v3  ;;  %v278_v41 = vadd.f32 %v277_v31, %v276_v27 }
  0x42   :  { %v266_v39 = vadd.f32 %v265_v29, %v264_v4  ;;  %v272_v40 = vrot.slane %v271_v30, 2  ;;  %v284_v44 = vrot.slane %v283_v35, 4  ;;  %v291_v45 = vrot.slane %v290_v36, 4 }
  0x43   :  { %v254_v42 = vadd.f32 %v253_v34, %v252_v26  ;;  %v297_v46 = vsel %vm79_vm0, %v46_v23, 0.0  ;;  %v260_v47 = vrot.slane %v259_v38, 1  ;;  %v279_v51 = vrot.slane %v278_v41, 2 }
  0x44   :  { %v267_v49 = vrot.slane %v266_v39, 1  ;;  %v273_v50 = vadd.f32 %v272_v40, %v271_v30  ;;  %v285_v56 = vadd.f32 %v284_v44, %v283_v35  ;;  %v292_v57 = vadd.f32 %v291_v45, %v290_v36 }
  0x45   :  { %v298_v58 = vrot.slane %v297_v46, 4  ;;  %v544_v59 = vmul.f32 0.125, %v1658_v37  ;;  %v261_v60 = vadd.f32 %v260_v47, %v259_v38  ;;  %v280_v0 = vadd.f32 %v279_v51, %v278_v41 }
  0x46   :  { %v268_v61 = vadd.f32 %v267_v49, %v266_v39  ;;  %v274_v63 = vrot.slane %v273_v50, 1  ;;  %v286_v1 = vrot.slane %v285_v56, 2  ;;  %v293_v55 = vrot.slane %v292_v57, 2 }
  0x47   :  { %v299_v2 = vadd.f32 %v298_v58, %v297_v46  ;;  %v545_v5 = vmul.f32 0.125, %v1666_v43  ;;  %v281_v8 = vrot.slane %v280_v0, 1  ;;  %v546_v9 = vmul.f32 0.125, %v1671_v48  ;;  %v48_v58 = vld [vmem:[%s2037_s0 + $0x108] sm:$0xff] }
  0x48   :  { %v275_v7 = vadd.f32 %v274_v63, %v273_v50  ;;  %v547_v10 = vmul.f32 0.125, %v1688_v6  ;;  %v287_v11 = vadd.f32 %v286_v1, %v285_v56  ;;  %v294_v12 = vadd.f32 %v293_v55, %v292_v57  ;;  %v47_v57 = vld [vmem:[%s2037_s0 + $0x100] sm:$0xff] }
  0x49   :  { %v300_v16 = vrot.slane %v299_v2, 2  ;;  %v548_v37 = vmul.f32 0.125, %v1699_v15  ;;  %v282_v52 = vadd.f32 %v281_v8, %v280_v0  ;;  %v549_v17 = vmul.f32 0.125, %v233_v62 }
  0x4a   :  { %v550_v53 = vmul.f32 0.125, %v240_v24  ;;  %v551_v18 = vmul.f32 0.125, %v247_v33  ;;  %v288_v54 = vrot.slane %v287_v11, 1  ;;  %v295_v19 = vrot.slane %v294_v12, 1 }
  0x4b   :  { %v301_v20 = vadd.f32 %v300_v16, %v299_v2  ;;  %v552_v21 = vmul.f32 0.125, %v254_v42  ;;  %v553_v43 = vmul.f32 0.125, %v261_v60  ;;  %v554_v3 = vmul.f32 0.125, %v268_v61 }
  0x4c   :  { %v555_v4 = vmul.f32 0.125, %v275_v7  ;;  %v556_v13 = vmul.f32 0.125, %v282_v52  ;;  %v289_v48 = vadd.f32 %v288_v54, %v287_v11  ;;  %v296_v14 = vadd.f32 %v295_v19, %v294_v12  ;;  %v50_v7 = vld [vmem:[%s2037_s0 + $0x118] sm:$0xff] }
  0x4d   :  { %v302_v6 = vrot.slane %v301_v20, 1  ;;  %v608_v22 = vpack.c.bf16 %v544_v59, %v544_v59  ;;  %v609_v23 = vpack.c.bf16 %v545_v5, %v545_v5  ;;  %v610_v25 = vpack.c.bf16 %v546_v9, %v546_v9  ;;  %v49_v5 = vld [vmem:[%s2037_s0 + $0x110] sm:$0xff] }
  0x4e   :  { %v611_v26 = vpack.c.bf16 %v547_v10, %v547_v10  ;;  %v612_v15 = vpack.c.bf16 %v548_v37, %v548_v37  ;;  %v557_v62 = vmul.f32 0.125, %v289_v48  ;;  %v558_v24 = vmul.f32 0.125, %v296_v14 }
  0x4f   :  { %v303_v27 = vadd.f32 %v302_v6, %v301_v20  ;;  %v613_v28 = vpack.c.bf16 %v549_v17, %v549_v17  ;;  %v614_v29 = vpack.c.bf16 %v550_v53, %v550_v53  ;;  %v615_v30 = vpack.c.bf16 %v551_v18, %v551_v18 }
  0x50   :  { %v616_v31 = vpack.c.bf16 %v552_v21, %v552_v21  ;;  %v617_v33 = vpack.c.bf16 %v553_v43, %v553_v43  ;;  %v618_v35 = vpack.c.bf16 %v554_v3, %v554_v3  ;;  %v619_v36 = vpack.c.bf16 %v555_v4, %v555_v4  ;;  %v51_v21 = vld [vmem:[%s2037_s0 + $0x120] sm:$0xff] }
  0x51   :  { %v559_v34 = vmul.f32 0.125, %v303_v27  ;;  %v620_v38 = vpack.c.bf16 %v556_v13, %v556_v13  ;;  %v621_v39 = vpack.c.bf16 %v557_v62, %v557_v62  ;;  %v622_v40 = vpack.c.bf16 %v558_v24, %v558_v24 }
  0x52   :  { %v716_v41 = vunpack.c.l.b16 %v608_v22  ;;  %v717_v42 = vunpack.c.l.b16 %v609_v23  ;;  %v718_v45 = vunpack.c.l.b16 %v610_v25  ;;  %v719_v46 = vunpack.c.l.b16 %v611_v26  ;;  %v52_v23 = vld [vmem:[%s2037_s0 + $0x128] sm:$0xff]  ;;  %v53_v25 = vld [vmem:[%s2037_s0 + $0x130] sm:$0xff] }
  0x53   :  { %v623_v44 = vpack.c.bf16 %v559_v34, %v559_v34  ;;  %v720_v47 = vunpack.c.l.b16 %v612_v15  ;;  %v721_v49 = vunpack.c.l.b16 %v613_v28  ;;  %v722_v50 = vunpack.c.l.b16 %v614_v29 }
  0x54   :  { %v723_v51 = vunpack.c.l.b16 %v615_v30  ;;  %v724_v56 = vunpack.c.l.b16 %v616_v31  ;;  %v725_v59 = vunpack.c.l.b16 %v617_v33  ;;  %v726_v60 = vunpack.c.l.b16 %v618_v35  ;;  %v54_v30 = vld [vmem:[%s2037_s0 + $0x138] sm:$0xff] }
  0x55   :  { %v727_v61 = vunpack.c.l.b16 %v619_v36  ;;  %v728_v63 = vunpack.c.l.b16 %v620_v38  ;;  %v729_v0 = vunpack.c.l.b16 %v621_v39  ;;  %v730_v1 = vunpack.c.l.b16 %v622_v40 }
  0x56   :  { %v731_v55 = vunpack.c.l.b16 %v623_v44  ;;  %v753_v2 = vsel %vm732_vm1, %v717_v42, %v716_v41  ;;  %v760_v9 = vsel %vm732_vm1, %v725_v59, %v724_v56  ;;  %v304_v10 = vsel %vm79_vm0, %v47_v57, 0.0 }
  0x57   :  { %v754_v8 = vsel %vm734_vm2, %v718_v45, %v753_v2  ;;  %v311_v11 = vsel %vm79_vm0, %v48_v58, 0.0  ;;  %v761_v16 = vsel %vm734_vm2, %v726_v60, %v760_v9  ;;  %v305_v37 = vrot.slane %v304_v10, 4  ;;  %v55_v45 = vld [vmem:[%s2037_s0 + $0x140] sm:$0xff] }
  0x58   :  { %v755_v12 = vsel %vm736_vm3, %v719_v46, %v754_v8  ;;  %v312_v52 = vrot.slane %v311_v11, 4  ;;  %v762_v53 = vsel %vm736_vm3, %v727_v61, %v761_v16  ;;  %v318_v18 = vsel %vm79_vm0, %v49_v5, 0.0  ;;  %v56_v46 = vld [vmem:[%s2037_s0 + $0x148] sm:$0xff] }
  0x59   :  { %v756_v17 = vsel %vm738_vm4, %v720_v47, %v755_v12  ;;  %v325_v54 = vsel %vm79_vm0, %v50_v7, 0.0  ;;  %v763_v20 = vsel %vm738_vm4, %v728_v63, %v762_v53  ;;  %v306_v43 = vadd.f32 %v305_v37, %v304_v10  ;;  %v59_v53 = vld [vmem:[%s2037_s0 + $0x160] sm:$0xff] }
  0x5a   :  { %v757_v19 = vsel %vm740_vm5, %v721_v49, %v756_v17  ;;  %v313_v3 = vadd.f32 %v312_v52, %v311_v11  ;;  %v764_v13 = vsel %vm740_vm5, %v729_v0, %v763_v20  ;;  %v319_v48 = vrot.slane %v318_v18, 4 }
  0x5b   :  { %v758_v4 = vsel %vm742_vm6, %v722_v50, %v757_v19  ;;  %v326_v14 = vrot.slane %v325_v54, 4  ;;  %v765_v22 = vsel %vm742_vm6, %v730_v1, %v764_v13  ;;  %v307_v26 = vrot.slane %v306_v43, 2  ;;  %v57_v1 = vld [vmem:[%s2037_s0 + $0x150] sm:$0xff]  ;;  %v60_v13 = vld [vmem:[%s2037_s0 + $0x168] sm:$0xff] }
  0x5c   :  { %v759_v6 = vsel %vm744_vm7, %v723_v51, %v758_v4  ;;  %v314_v15 = vrot.slane %v313_v3, 2  ;;  %v766_v27 = vsel %vm744_vm7, %v731_v55, %v765_v22  ;;  %v320_v62 = vadd.f32 %v319_v48, %v318_v18  ;;  %v58_v55 = vld [vmem:[%s2037_s0 + $0x158] sm:$0xff] }
  0x5d   :  { %v327_v24 = vadd.f32 %v326_v14, %v325_v54  ;;  %v332_v28 = vsel %vm79_vm0, %v51_v21, 0.0  ;;  %v768_v29 = vpack.c.b16 %v766_v27, %v759_v6  ;;  %v308_v31 = vadd.f32 %v307_v26, %v306_v43  ;;  %v61_v27 = vld [vmem:[%s2037_s0 + $0x170] sm:$0xff] }
  0x5e   :  { %v315_v33 = vadd.f32 %v314_v15, %v313_v3  ;;  %v333_v34 = vrot.slane %v332_v28, 4  ;;  %v321_v35 = vrot.slane %v320_v62, 2  ;;  %v339_v38 = vsel %vm79_vm0, %v52_v23, 0.0 }
  0x5f   :  { %v328_v36 = vrot.slane %v327_v24, 2  ;;  %v346_v39 = vsel %vm79_vm0, %v53_v25, 0.0  ;;  %772 = vxpose.xlu0.c.b16.end [2/2] (short) (narrow) %v768_v29, 16  ;;  %v309_v40 = vrot.slane %v308_v31, 1  ;;  %v340_v44 = vrot.slane %v339_v38, 4 }
  0x60   :  { %v316_v41 = vrot.slane %v315_v33, 1  ;;  %v334_v42 = vadd.f32 %v333_v34, %v332_v28  ;;  %v322_v47 = vadd.f32 %v321_v35, %v320_v62  ;;  %v347_v50 = vrot.slane %v346_v39, 4  ;;  %v62_v35 = vld [vmem:[%s2037_s0 + $0x178] sm:$0xff] }
  0x61   :  { %v329_v49 = vadd.f32 %v328_v36, %v327_v24  ;;  %v353_v51 = vsel %vm79_vm0, %v54_v30, 0.0  ;;  %v1784_v56 = vadd.f32 %v309_v40, %v308_v31  ;;  %v341_v59 = vadd.f32 %v340_v44, %v339_v38 }
  0x62   :  { %v1786_v57 = vadd.f32 %v316_v41, %v315_v33  ;;  %v335_v58 = vrot.slane %v334_v42, 2  ;;  %v323_v60 = vrot.slane %v322_v47, 1  ;;  %v348_v63 = vadd.f32 %v347_v50, %v346_v39 }
  0x63   :  { %v330_v61 = vrot.slane %v329_v49, 1  ;;  %v354_v0 = vrot.slane %v353_v51, 4  ;;  %v342_v5 = vrot.slane %v341_v59, 2  ;;  %v360_v7 = vsel %vm79_vm0, %v55_v45, 0.0 }
  0x64   :  { %v336_v2 = vadd.f32 %v335_v58, %v334_v42  ;;  %v367_v8 = vsel %vm79_vm0, %v56_v46, 0.0  ;;  %v1796_v9 = vadd.f32 %v323_v60, %v322_v47  ;;  %v349_v11 = vrot.slane %v348_v63, 2 }
  0x65   :  { %v1798_v10 = vadd.f32 %v330_v61, %v329_v49  ;;  %v355_v12 = vadd.f32 %v354_v0, %v353_v51  ;;  %v343_v37 = vadd.f32 %v342_v5, %v341_v59  ;;  %v361_v52 = vrot.slane %v360_v7, 4 }
  0x66   :  { %v337_v16 = vrot.slane %v336_v2, 1  ;;  %v368_v17 = vrot.slane %v367_v8, 4  ;;  %v350_v18 = vadd.f32 %v349_v11, %v348_v63  ;;  %v374_v19 = vsel %vm79_vm0, %v57_v1, 0.0 }
  0x67   :  { %v356_v54 = vrot.slane %v355_v12, 2  ;;  %v381_v20 = vsel %vm79_vm0, %v58_v55, 0.0  ;;  %v344_v43 = vrot.slane %v343_v37, 1  ;;  %v362_v3 = vadd.f32 %v361_v52, %v360_v7 }
  0x68   :  { %v338_v21 = vadd.f32 %v337_v16, %v336_v2  ;;  %v369_v4 = vadd.f32 %v368_v17, %v367_v8  ;;  %v351_v48 = vrot.slane %v350_v18, 1  ;;  %v375_v6 = vrot.slane %v374_v19, 4 }
  0x69   :  { %v357_v14 = vadd.f32 %v356_v54, %v355_v12  ;;  %v382_v22 = vrot.slane %v381_v20, 4  ;;  %v345_v23 = vadd.f32 %v344_v43, %v343_v37  ;;  %v363_v25 = vrot.slane %v362_v3, 2 }
  0x6a   :  { %v370_v26 = vrot.slane %v369_v4, 2  ;;  %v388_v15 = vsel %vm79_vm0, %v59_v53, 0.0  ;;  %v352_v62 = vadd.f32 %v351_v48, %v350_v18  ;;  %v376_v28 = vadd.f32 %v375_v6, %v374_v19 }
  0x6b   :  { %v358_v24 = vrot.slane %v357_v14, 1  ;;  %v383_v29 = vadd.f32 %v382_v22, %v381_v20  ;;  %v364_v30 = vadd.f32 %v363_v25, %v362_v3  ;;  %v389_v33 = vrot.slane %v388_v15, 4 }
  0x6c   :  { %v371_v31 = vadd.f32 %v370_v26, %v369_v4  ;;  %v395_v34 = vsel %vm79_vm0, %v60_v13, 0.0  ;;  %v377_v38 = vrot.slane %v376_v28, 2  ;;  %v402_v45 = vsel %vm79_vm0, %v61_v27, 0.0 }
  0x6d   :  { %v359_v36 = vadd.f32 %v358_v24, %v357_v14  ;;  %v384_v39 = vrot.slane %v383_v29, 2  ;;  %v396_v40 = vrot.slane %v395_v34, 4  ;;  %v365_v41 = vrot.slane %v364_v30, 1 }
  0x6e   :  { %v372_v42 = vrot.slane %v371_v31, 1  ;;  %v390_v44 = vadd.f32 %v389_v33, %v388_v15  ;;  %v378_v46 = vadd.f32 %v377_v38, %v376_v28  ;;  %v403_v50 = vrot.slane %v402_v45, 4 }
  0x6f   :  { %v385_v47 = vadd.f32 %v384_v39, %v383_v29  ;;  %v397_v49 = vadd.f32 %v396_v40, %v395_v34  ;;  %v366_v51 = vadd.f32 %v365_v41, %v364_v30  ;;  %v409_v60 = vsel %vm79_vm0, %v62_v35, 0.0 }
  0x70   :  { %v373_v58 = vadd.f32 %v372_v42, %v371_v31  ;;  %v391_v59 = vrot.slane %v390_v44, 2  ;;  %v379_v61 = vrot.slane %v378_v46, 1  ;;  %v404_v1 = vadd.f32 %v403_v50, %v402_v45 }
  0x71   :  { %v386_v63 = vrot.slane %v385_v47, 1  ;;  %v398_v0 = vrot.slane %v397_v49, 2  ;;  %v410_v2 = vrot.slane %v409_v60, 4  ;;  %v560_v5 = vmul.f32 0.125, %v1784_v56 }
  0x72   :  { %v392_v55 = vadd.f32 %v391_v59, %v390_v44  ;;  %v561_v7 = vmul.f32 0.125, %v1786_v57  ;;  %v380_v8 = vadd.f32 %v379_v61, %v378_v46  ;;  %v405_v16 = vrot.slane %v404_v1, 2 }
  0x73   :  { %v387_v11 = vadd.f32 %v386_v63, %v385_v47  ;;  %v399_v12 = vadd.f32 %v398_v0, %v397_v49  ;;  %v411_v52 = vadd.f32 %v410_v2, %v409_v60  ;;  %v562_v17 = vmul.f32 0.125, %v1796_v9  ;;  %v63_v63 = vld [vmem:[%s2037_s0 + $0x180] sm:$0xff]  ;;  %v64_v0 = vld [vmem:[%s2037_s0 + $0x188] sm:$0xff] }
  0x74   :  { %v393_v37 = vrot.slane %v392_v55, 1  ;;  %v563_v53 = vmul.f32 0.125, %v1798_v10  ;;  %v406_v54 = vadd.f32 %v405_v16, %v404_v1  ;;  %v564_v19 = vmul.f32 0.125, %v338_v21  ;;  %v65_v16 = vld [vmem:[%s2037_s0 + $0x190] sm:$0xff] }
  0x75   :  { %v400_v18 = vrot.slane %v399_v12, 1  ;;  %v565_v20 = vmul.f32 0.125, %v345_v23  ;;  %v412_v3 = vrot.slane %v411_v52, 2  ;;  %v566_v4 = vmul.f32 0.125, %v352_v62 }
  0x76   :  { %v394_v43 = vadd.f32 %v393_v37, %v392_v55  ;;  %v567_v56 = vmul.f32 0.125, %v359_v36  ;;  %v407_v57 = vrot.slane %v406_v54, 1  ;;  %v568_v48 = vmul.f32 0.125, %v366_v51  ;;  %v66_v37 = vld [vmem:[%s2037_s0 + $0x198] sm:$0xff] }
  0x77   :  { %v401_v13 = vadd.f32 %v400_v18, %v399_v12  ;;  %v569_v14 = vmul.f32 0.125, %v373_v58  ;;  %v413_v6 = vadd.f32 %v412_v3, %v411_v52  ;;  %v570_v22 = vmul.f32 0.125, %v380_v8 }
  0x78   :  { %v571_v25 = vmul.f32 0.125, %v387_v11  ;;  %v572_v26 = vmul.f32 0.125, %v394_v43  ;;  %v408_v15 = vadd.f32 %v407_v57, %v406_v54  ;;  %v624_v27 = vpack.c.bf16 %v560_v5, %v560_v5 }
  0x79   :  { %v573_v9 = vmul.f32 0.125, %v401_v13  ;;  %v625_v10 = vpack.c.bf16 %v561_v7, %v561_v7  ;;  %v414_v24 = vrot.slane %v413_v6, 1  ;;  %v626_v28 = vpack.c.bf16 %v562_v17, %v562_v17 }
  0x7a   :  { %v627_v21 = vpack.c.bf16 %v563_v53, %v563_v53  ;;  %v628_v23 = vpack.c.bf16 %v564_v19, %v564_v19  ;;  %v574_v29 = vmul.f32 0.125, %v408_v15  ;;  %v629_v30 = vpack.c.bf16 %v565_v20, %v565_v20  ;;  %v68_v15 = vld [vmem:[%s2037_s0 + $0x1a8] sm:$0xff] }
  0x7b   :  { %v630_v62 = vpack.c.bf16 %v566_v4, %v566_v4  ;;  %v631_v31 = vpack.c.bf16 %v567_v56, %v567_v56  ;;  %v415_v33 = vadd.f32 %v414_v24, %v413_v6  ;;  %v632_v34 = vpack.c.bf16 %v568_v48, %v568_v48 }
  0x7c   :  { %v633_v35 = vpack.c.bf16 %v569_v14, %v569_v14  ;;  %v634_v36 = vpack.c.bf16 %v570_v22, %v570_v22  ;;  %v635_v38 = vpack.c.bf16 %v571_v25, %v571_v25  ;;  %v636_v39 = vpack.c.bf16 %v572_v26, %v572_v26  ;;  %v67_v14 = vld [vmem:[%s2037_s0 + $0x1a0] sm:$0xff] }
  0x7d   :  { %v637_v40 = vpack.c.bf16 %v573_v9, %v573_v9  ;;  %v638_v41 = vpack.c.bf16 %v574_v29, %v574_v29  ;;  %v575_v42 = vmul.f32 0.125, %v415_v33  ;;  %v1090_v44 = vunpack.c.l.b16 %v624_v27  ;;  %v70_v33 = vld [vmem:[%s2037_s0 + $0x1b8] sm:$0xff] }
  0x7e   :  { %v1091_v45 = vunpack.c.l.b16 %v625_v10  ;;  %v1092_v46 = vunpack.c.l.b16 %v626_v28  ;;  %v1093_v47 = vunpack.c.l.b16 %v627_v21  ;;  %v1094_v49 = vunpack.c.l.b16 %v628_v23  ;;  %v69_v28 = vld [vmem:[%s2037_s0 + $0x1b0] sm:$0xff] }
  0x7f   :  { %v1095_v50 = vunpack.c.l.b16 %v629_v30  ;;  %v1096_v51 = vunpack.c.l.b16 %v630_v62  ;;  %v639_v58 = vpack.c.bf16 %v575_v42, %v575_v42  ;;  %v1097_v59 = vunpack.c.l.b16 %v631_v31 }
  0x80   :  { %v1098_v60 = vunpack.c.l.b16 %v632_v34  ;;  %v1099_v61 = vunpack.c.l.b16 %v633_v35  ;;  %v1100_v1 = vunpack.c.l.b16 %v634_v36  ;;  %v1101_v55 = vunpack.c.l.b16 %v635_v38 }
  0x81   :  { %v1102_v2 = vunpack.c.l.b16 %v636_v39  ;;  %v1103_v5 = vunpack.c.l.b16 %v637_v40  ;;  %v1104_v7 = vunpack.c.l.b16 %v638_v41  ;;  %v1105_v8 = vunpack.c.l.b16 %v639_v58 }
  0x82   :  { %v1122_v11 = vsel %vm732_vm1, %v1091_v45, %v1090_v44  ;;  %v1129_v12 = vsel %vm732_vm1, %v1099_v61, %v1098_v60  ;;  %v416_v53 = vsel %vm79_vm0, %v63_v63, 0.0  ;;  %v423_v18 = vsel %vm79_vm0, %v64_v0, 0.0 }
  0x83   :  { %v1123_v52 = vsel %vm734_vm2, %v1092_v46, %v1122_v11  ;;  %v1130_v17 = vsel %vm734_vm2, %v1100_v1, %v1129_v12  ;;  %v417_v20 = vrot.slane %v416_v53, 4  ;;  %v424_v43 = vrot.slane %v423_v18, 4 }
  0x84   :  { %v1124_v54 = vsel %vm736_vm3, %v1093_v47, %v1123_v52  ;;  %v1131_v19 = vsel %vm736_vm3, %v1101_v55, %v1130_v17  ;;  %v430_v56 = vsel %vm79_vm0, %v65_v16, 0.0  ;;  %v437_v13 = vsel %vm79_vm0, %v66_v37, 0.0  ;;  %v71_v47 = vld [vmem:[%s2037_s0 + $0x1c0] sm:$0xff] }
  0x85   :  { %v1125_v3 = vsel %vm738_vm4, %v1094_v49, %v1124_v54  ;;  %v1132_v4 = vsel %vm738_vm4, %v1102_v2, %v1131_v19  ;;  %v418_v6 = vadd.f32 %v417_v20, %v416_v53  ;;  %v425_v22 = vadd.f32 %v424_v43, %v423_v18  ;;  %v72_v49 = vld [vmem:[%s2037_s0 + $0x1c8] sm:$0xff]  ;;  %v73_v2 = vld [vmem:[%s2037_s0 + $0x1d0] sm:$0xff]  ;;  %v75_v19 = vld [vmem:[%s2037_s0 + $0x1e0] sm:$0xff] }
  0x86   :  { %v1126_v57 = vsel %vm740_vm5, %v1095_v50, %v1125_v3  ;;  %v1133_v48 = vsel %vm740_vm5, %v1103_v5, %v1132_v4  ;;  %v431_v9 = vrot.slane %v430_v56, 4  ;;  %v438_v27 = vrot.slane %v437_v13, 4  ;;  %v74_v5 = vld [vmem:[%s2037_s0 + $0x1d8] sm:$0xff] }
  0x87   :  { %v1127_v25 = vsel %vm742_vm6, %v1096_v51, %v1126_v57  ;;  %v1134_v26 = vsel %vm742_vm6, %v1104_v7, %v1133_v48  ;;  %v419_v21 = vrot.slane %v418_v6, 2  ;;  %v426_v23 = vrot.slane %v425_v22, 2 }
  0x88   :  { %v1128_v10 = vsel %vm744_vm7, %v1097_v59, %v1127_v25  ;;  %v1135_v24 = vsel %vm744_vm7, %v1105_v8, %v1134_v26  ;;  %v432_v30 = vadd.f32 %v431_v9, %v430_v56  ;;  %v439_v62 = vadd.f32 %v438_v27, %v437_v13 }
  0x89   :  { %v1150_v29 = vpack.c.b16 %v1135_v24, %v1128_v10  ;;  %v444_v31 = vsel %vm79_vm0, %v67_v14, 0.0  ;;  %v420_v34 = vadd.f32 %v419_v21, %v418_v6  ;;  %v427_v35 = vadd.f32 %v426_v23, %v425_v22  ;;  %v76_v14 = vld [vmem:[%s2037_s0 + $0x1e8] sm:$0xff]  ;;  %v77_v6 = vld [vmem:[%s2037_s0 + $0x1f0] sm:$0xff] }
  0x8a   :  { %v445_v36 = vrot.slane %v444_v31, 4  ;;  %v451_v38 = vsel %vm79_vm0, %v68_v15, 0.0  ;;  %v433_v39 = vrot.slane %v432_v30, 2  ;;  %v440_v40 = vrot.slane %v439_v62, 2 }
  0x8b   :  { %1154 = vxpose.xlu1.c.b16.start [1/2] (short) (narrow) %v1150_v29, 16  ;;  %v452_v41 = vrot.slane %v451_v38, 4  ;;  %v458_v42 = vsel %vm79_vm0, %v69_v28, 0.0  ;;  %v421_v44 = vrot.slane %v420_v34, 1  ;;  %v465_v59 = vsel %vm79_vm0, %v70_v33, 0.0 }
  0x8c   :  { %v446_v45 = vadd.f32 %v445_v36, %v444_v31  ;;  %v459_v46 = vrot.slane %v458_v42, 4  ;;  %v434_v50 = vadd.f32 %v433_v39, %v432_v30  ;;  %v441_v51 = vadd.f32 %v440_v40, %v439_v62  ;;  %v78_v30 = vld [vmem:[%s2037_s0 + $0x1f8] sm:$0xff] }
  0x8d   :  { %v453_v58 = vadd.f32 %v452_v41, %v451_v38  ;;  %v428_v60 = vrot.slane %v427_v35, 1  ;;  %v466_v55 = vrot.slane %v465_v59, 4  ;;  %v472_v11 = vsel %vm79_vm0, %v71_v47, 0.0 }
  0x8e   :  { %v447_v61 = vrot.slane %v446_v45, 2  ;;  %v460_v63 = vadd.f32 %v459_v46, %v458_v42  ;;  %v435_v0 = vrot.slane %v434_v50, 1  ;;  %v442_v7 = vrot.slane %v441_v51, 1 }
  0x8f   :  { %v454_v1 = vrot.slane %v453_v58, 2  ;;  %v479_v12 = vsel %vm79_vm0, %v72_v49, 0.0  ;;  %v1882_v16 = vadd.f32 %v421_v44, %v420_v34  ;;  %v467_v52 = vadd.f32 %v466_v55, %v465_v59 }
  0x90   :  { %v461_v8 = vrot.slane %v460_v63, 2  ;;  %v448_v37 = vadd.f32 %v447_v61, %v446_v45  ;;  %v1884_v17 = vadd.f32 %v428_v60, %v427_v35  ;;  %v473_v18 = vrot.slane %v472_v11, 4 }
  0x91   :  { %v455_v53 = vadd.f32 %v454_v1, %v453_v58  ;;  %v480_v54 = vrot.slane %v479_v12, 4  ;;  %v468_v43 = vrot.slane %v467_v52, 2  ;;  %v486_v3 = vsel %vm79_vm0, %v73_v2, 0.0 }
  0x92   :  { %v462_v20 = vadd.f32 %v461_v8, %v460_v63  ;;  %v493_v4 = vsel %vm79_vm0, %v74_v5, 0.0  ;;  %v436_v56 = vadd.f32 %v435_v0, %v434_v50  ;;  %v443_v13 = vadd.f32 %v442_v7, %v441_v51 }
  0x93   :  { %v474_v57 = vadd.f32 %v473_v18, %v472_v11  ;;  %v481_v48 = vadd.f32 %v480_v54, %v479_v12  ;;  %v449_v22 = vrot.slane %v448_v37, 1  ;;  %v469_v25 = vadd.f32 %v468_v43, %v467_v52 }
  0x94   :  { %v487_v26 = vrot.slane %v486_v3, 4  ;;  %v494_v15 = vrot.slane %v493_v4, 4  ;;  %v456_v9 = vrot.slane %v455_v53, 1  ;;  %v500_v24 = vsel %vm79_vm0, %v75_v19, 0.0 }
  0x95   :  { %v475_v27 = vrot.slane %v474_v57, 2  ;;  %v482_v10 = vrot.slane %v481_v48, 2  ;;  %v463_v28 = vrot.slane %v462_v20, 1  ;;  %v501_v29 = vrot.slane %v500_v24, 4 }
  0x96   :  { %v488_v21 = vadd.f32 %v487_v26, %v486_v3  ;;  %v495_v23 = vadd.f32 %v494_v15, %v493_v4  ;;  %v507_v33 = vsel %vm79_vm0, %v76_v14, 0.0  ;;  %v514_v34 = vsel %vm79_vm0, %v77_v6, 0.0 }
  0x97   :  { %v476_v62 = vadd.f32 %v475_v27, %v474_v57  ;;  %v483_v31 = vadd.f32 %v482_v10, %v481_v48  ;;  %v470_v35 = vrot.slane %v469_v25, 1  ;;  %v502_v39 = vadd.f32 %v501_v29, %v500_v24 }
  0x98   :  { %v489_v36 = vrot.slane %v488_v21, 2  ;;  %v496_v38 = vrot.slane %v495_v23, 2  ;;  %v508_v42 = vrot.slane %v507_v33, 4  ;;  %v515_v44 = vrot.slane %v514_v34, 4 }
  0x99   :  { %v477_v40 = vrot.slane %v476_v62, 1  ;;  %v484_v41 = vrot.slane %v483_v31, 1  ;;  %v503_v47 = vrot.slane %v502_v39, 2  ;;  %v521_v49 = vsel %vm79_vm0, %v78_v30, 0.0 }
  0x9a   :  { %v490_v45 = vadd.f32 %v489_v36, %v488_v21  ;;  %v497_v46 = vadd.f32 %v496_v38, %v495_v23  ;;  %v450_v50 = vadd.f32 %v449_v22, %v448_v37  ;;  %v457_v51 = vadd.f32 %v456_v9, %v455_v53 }
  0x9b   :  { %v509_v58 = vadd.f32 %v508_v42, %v507_v33  ;;  %v516_v59 = vadd.f32 %v515_v44, %v514_v34  ;;  %v504_v63 = vadd.f32 %v503_v47, %v502_v39  ;;  %v522_v0 = vrot.slane %v521_v49, 4 }
  0x9c   :  { %v491_v60 = vrot.slane %v490_v45, 1  ;;  %v498_v61 = vrot.slane %v497_v46, 1  ;;  %v464_v1 = vadd.f32 %v463_v28, %v462_v20  ;;  %v471_v55 = vadd.f32 %v470_v35, %v469_v25 }
  0x9d   :  { %v510_v2 = vrot.slane %v509_v58, 2  ;;  %v517_v5 = vrot.slane %v516_v59, 2  ;;  %v478_v7 = vadd.f32 %v477_v40, %v476_v62  ;;  %v485_v8 = vadd.f32 %v484_v41, %v483_v31 }
  0x9e   :  { %v505_v11 = vrot.slane %v504_v63, 1  ;;  %v523_v12 = vadd.f32 %v522_v0, %v521_v49  ;;  %v492_v52 = vadd.f32 %v491_v60, %v490_v45  ;;  %v576_v37 = vmul.f32 0.125, %v1882_v16 }
  0x9f   :  { %v511_v18 = vadd.f32 %v510_v2, %v509_v58  ;;  %v518_v54 = vadd.f32 %v517_v5, %v516_v59  ;;  %v499_v53 = vadd.f32 %v498_v61, %v497_v46  ;;  %v577_v3 = vmul.f32 0.125, %v1884_v17 }
  0xa0   :  { %v506_v19 = vadd.f32 %v505_v11, %v504_v63  ;;  %v524_v43 = vrot.slane %v523_v12, 2  ;;  %v578_v20 = vmul.f32 0.125, %v436_v56  ;;  %v579_v48 = vmul.f32 0.125, %v443_v13 }
  0xa1   :  { %v512_v4 = vrot.slane %v511_v18, 1  ;;  %v519_v57 = vrot.slane %v518_v54, 1  ;;  %v580_v6 = vmul.f32 0.125, %v450_v50  ;;  %v581_v22 = vmul.f32 0.125, %v457_v51 }
  0xa2   :  { %v525_v14 = vadd.f32 %v524_v43, %v523_v12  ;;  %v584_v25 = vmul.f32 0.125, %v478_v7  ;;  %v585_v9 = vmul.f32 0.125, %v485_v8  ;;  %v586_v27 = vmul.f32 0.125, %v492_v52 }
  0xa3   :  { %v513_v26 = vadd.f32 %v512_v4, %v511_v18  ;;  %v520_v15 = vadd.f32 %v519_v57, %v518_v54  ;;  %v582_v24 = vmul.f32 0.125, %v464_v1  ;;  %v587_v16 = vmul.f32 0.125, %v499_v53 }
  0xa4   :  { %v526_v10 = vrot.slane %v525_v14, 1  ;;  %v588_v28 = vmul.f32 0.125, %v506_v19  ;;  %v583_v21 = vmul.f32 0.125, %v471_v55  ;;  %v640_v29 = vpack.c.bf16 %v576_v37, %v576_v37 }
  0xa5   :  { %v589_v23 = vmul.f32 0.125, %v513_v26  ;;  %v641_v17 = vpack.c.bf16 %v577_v3, %v577_v3  ;;  %v590_v62 = vmul.f32 0.125, %v520_v15  ;;  %v642_v56 = vpack.c.bf16 %v578_v20, %v578_v20  ;;  %v1504_v15 = vld [vmem:[%s2038_s1 + $0x30] ss:$24 sps:$4 sm:$0xff]  }
  0xa6   :  { %v527_v30 = vadd.f32 %v526_v10, %v525_v14  ;;  %v643_v13 = vpack.c.bf16 %v579_v48, %v579_v48  ;;  %v644_v31 = vpack.c.bf16 %v580_v6, %v580_v6  ;;  %v648_v33 = vpack.c.bf16 %v584_v25, %v584_v25  ;;  %v1503_v25 = vld [vmem:[%s2038_s1 + $0x14] ss:$24 sps:$4 sm:$0xff]   ;;  %v1506_v10 = vld [vmem:[%s2038_s1] ss:$24 sps:$4 sm:$0xff]  }
  0xa7   :  { %v649_v34 = vpack.c.bf16 %v585_v9, %v585_v9  ;;  %v650_v35 = vpack.c.bf16 %v586_v27, %v586_v27  ;;  %v645_v38 = vpack.c.bf16 %v581_v22, %v581_v22  ;;  %v651_v39 = vpack.c.bf16 %v587_v16, %v587_v16  ;;  %v1498_v22 = vld [vmem:[%s2038_s1 + $0x40] ss:$24 sps:$4 sm:$0xff]   ;;  %v1501_v9 = vld [vmem:[%s2038_s1 + $0x10] ss:$24 sps:$4 sm:$0xff]   ;;  %v1505_v27 = vld [vmem:[%s2038_s1 + $0x4] ss:$24 sps:$4 sm:$0xff]  }
  0xa8   :  { %v591_v36 = vmul.f32 0.125, %v527_v30  ;;  %v652_v40 = vpack.c.bf16 %v588_v28, %v588_v28  ;;  %v646_v41 = vpack.c.bf16 %v582_v24, %v582_v24  ;;  %v653_v42 = vpack.c.bf16 %v589_v23, %v589_v23  ;;  %v1507_v24 = vld [vmem:[%s2038_s1 + $0x3c] ss:$24 sps:$4 sm:$0xff]   ;;  %v1508_v16 = vld [vmem:[%s2038_s1 + $0x38] ss:$24 sps:$4 sm:$0xff]  }
  0xa9   :  { %v1106_v44 = vunpack.c.l.b16 %v640_v29  ;;  %v1107_v45 = vunpack.c.l.b16 %v641_v17  ;;  %v647_v46 = vpack.c.bf16 %v583_v21, %v583_v21  ;;  %v654_v47 = vpack.c.bf16 %v590_v62, %v590_v62  ;;  %v1509_v28 = vld [vmem:[%s2038_s1 + $0xc] ss:$24 sps:$4 sm:$0xff]   ;;  %v1510_v21 = vld [vmem:[%s2038_s1 + $0x8] ss:$24 sps:$4 sm:$0xff]  }
  0xaa   :  { %v1108_v49 = vunpack.c.l.b16 %v642_v56  ;;  %v1109_v50 = vunpack.c.l.b16 %v643_v13  ;;  %v655_v51 = vpack.c.bf16 %v591_v36, %v591_v36  ;;  %v1114_v58 = vunpack.c.l.b16 %v648_v33 }
  0xab   :  { %v1115_v59 = vunpack.c.l.b16 %v649_v34  ;;  %v1116_v60 = vunpack.c.l.b16 %v650_v35  ;;  %v1110_v61 = vunpack.c.l.b16 %v644_v31  ;;  %v1111_v63 = vunpack.c.l.b16 %v645_v38 }
  0xac   :  { %v1117_v0 = vunpack.c.l.b16 %v651_v39  ;;  %v1118_v1 = vunpack.c.l.b16 %v652_v40  ;;  %v1119_v55 = vunpack.c.l.b16 %v653_v42  ;;  %v1136_v2 = vsel %vm732_vm1, %v1107_v45, %v1106_v44 }
  0xad   :  { %v1143_v5 = vsel %vm732_vm1, %v1115_v59, %v1114_v58  ;;  %v1112_v7 = vunpack.c.l.b16 %v646_v41  ;;  %v1120_v8 = vunpack.c.l.b16 %v654_v47  ;;  %v1137_v11 = vsel %vm734_vm2, %v1108_v49, %v1136_v2 }
  0xae   :  { %v1144_v12 = vsel %vm734_vm2, %v1116_v60, %v1143_v5  ;;  %v1511_v52 = vmov 0   ;;  %v1113_v18 = vunpack.c.l.b16 %v647_v46  ;;  %v1121_v54 = vunpack.c.l.b16 %v655_v51 }
  0xaf   :  { %883 = vmatprep.mubr.bf16.mxu0 %v1511_v52  ;;  %924 = vmatprep.mubr.bf16.mxu1 %v1511_v52  ;;  %v1138_v37 = vsel %vm736_vm3, %v1109_v50, %v1137_v11  ;;  %v1145_v53 = vsel %vm736_vm3, %v1117_v0, %v1144_v12  ;;  %vm847_vm8 = vcmask 261120   ;;  %v1390_v49 = vlaneseq }
  0xb0   :  { %v1139_v19 = vsel %vm738_vm4, %v1110_v61, %v1138_v37  ;;  %v1146_v43 = vsel %vm738_vm4, %v1118_v1, %v1145_v53  ;;  %v1387_v1 = vld [vmem:[%s2039_s2] sm:$0x3f]  ;;  %v1512_v53 = vmov 1983009808   ;;  %vm1380_vm9 = vcmask 1040384  }
  0xb1   :  { %v1140_v3 = vsel %vm740_vm5, %v1111_v63, %v1139_v19  ;;  %v1147_v4 = vsel %vm740_vm5, %v1119_v55, %v1146_v43  ;;  %v1960_v55 = vshrl.u32 %v1390_v49, 7  ;;  %v1435_v19 = vunpack.c.l.s4 %v1512_v53 }
  0xb2   :  { %v1141_v57 = vsel %vm742_vm6, %v1112_v7, %v1140_v3  ;;  %v1148_v20 = vsel %vm742_vm6, %v1120_v8, %v1147_v4 }
  0xb3   :  { %v1142_v48 = vsel %vm744_vm7, %v1113_v18, %v1141_v57  ;;  %v1149_v14 = vsel %vm744_vm7, %v1121_v54, %v1148_v20  ;;  %v1392_v37 = vsub.s32 0, %v1960_v55 }
  0xb4   :  { %v1151_v6 = vpack.c.b16 %v1149_v14, %v1142_v48  ;;  %v1396_v48 = vsub.s32 1, %v1960_v55 }
  0xb6   :  { %1155 = vxpose.xlu1.c.b16.end [2/2] (short) (narrow) %v1151_v6, 16 }
  0xbd   :  { %v779_v26 = vpop.trf.xlu0 }
  0xbe   :  { %1477 = vmatmul.mubr.msk.bf16.vlgmr.msra.gmra.mxu0 %vm847_vm8, %v779_v26  ;;  %1478 = vmatmul.mubr.msk.bf16.vlgmr.msra.gmra.mxu1 %vm847_vm8, %v779_v26 }
  0xbf   :  { %946 = vmatpush1.bf16.msra.mxu0 %v1498_v22  ;;  %1186 = vmatpush1.bf16.msra.mxu1 %v1504_v15 }
  0xc0   :  { %947 = vmatprep.subr.bf16.mxu0 %v1503_v25  ;;  %1187 = vmatprep.subr.bf16.mxu1 %v1505_v27 }
  0xc1   :  { %965 = vmatprep.mubr.bf16.mxu0 %v1511_v52  ;;  %1205 = vmatprep.mubr.bf16.mxu1 %v1511_v52 }
  0xc3   :  { %948 = vmatpush1.bf16.msra.mxu0 %v1501_v9  ;;  %1188 = vmatpush1.bf16.msra.mxu1 %v1506_v10 }
  0xc4   :  { %1226 = vmatprep.subr.bf16.mxu0 %v1507_v24  ;;  %1267 = vmatprep.subr.bf16.mxu1 %v1721_v32 }
  0xc6   :  { %1479 = vmatmul.mubr.msk.bf16.vlgmr.msra.gmra.mxu0 %vm847_vm8, %v779_v26 }
  0xc7   :  { %1227 = vmatpush1.bf16.msra.mxu0 %v1508_v16  ;;  %1246 = vmatprep.mubr.bf16.mxu0 %v1511_v52 }
  0xc8   :  { %1228 = vmatprep.subr.bf16.mxu0 %v1509_v28 }
  0xcb   :  { %1229 = vmatpush1.bf16.msra.mxu0 %v1510_v21 }
 0x114   :  { %v1162_v23 = vpop.trf.xlu1 }
 0x115   :  { %1480 = vmatmul.mubr.msk.bf16.vlgmr.msra.gmra.mxu1 %vm847_vm8, %v1162_v23  ;;  %1481 = vmatmul.mubr.msk.bf16.vlgmr.msra.gmra.mxu0 %vm847_vm8, %v1162_v23 }
 0x116   :  { %1268 = vmatpush1.bf16.msra.mxu1 %v1498_v22  ;;  %1287 = vmatprep.mubr.bf16.mxu1 %v1511_v52  ;;  %v1962_v52 = vmul.f32 8.5, %v1387_v1 }
 0x117   :  { %1269 = vmatprep.subr.bf16.mxu1 %v1503_v25 }
 0x118   :  { %v1967_v15 = vrot.slane %v1962_v52, %v1392_v37 }
 0x11a   :  { %1270 = vmatpush1.bf16.msra.mxu1 %v1501_v9  ;;  %v1436_v9 = vunpack.c.0.s8 %v1435_v19 }
 0x11d   :  { %1482 = vmatmul.mubr.msk.bf16.vlgmr.msra.gmra.mxu1 %vm847_vm8, %v1162_v23  ;;  %v1970_v23 = vrot.slane %v1962_v52, %v1396_v48 }
 0x17e   :  { %v885_v32 = vpop.f32.mrf.mxu0  ;;  %v926_v29 = vpop.f32.mrf.mxu1 }
 0x17f   :  { %v974_v38 = vrot.slane %v885_v32, 4  ;;  %v986_v39 = vrot.slane %v926_v29, 4 }
 0x180   :  { %v887_v17 = vpop.f32.mrf.mxu0  ;;  %v928_v30 = vpop.f32.mrf.mxu1 }
 0x181   :  { %v980_v40 = vrot.slane %v887_v17, 4  ;;  %v1011_v41 = vmax.f32 %v885_v32, %v974_v38  ;;  %v1023_v42 = vmax.f32 %v926_v29, %v986_v39  ;;  %v992_v45 = vrot.slane %v928_v30, 4 }
 0x182   :  { %v889_v62 = vpop.f32.mrf.mxu0  ;;  %v930_v56 = vpop.f32.mrf.mxu1  ;;  %v975_v58 = vadd.f32 %v974_v38, %v885_v32  ;;  %v987_v59 = vadd.f32 %v986_v39, %v926_v29  ;;  %v1400_v32 = vsub.s32 2, %v1960_v55 }
 0x183   :  { %v1017_v44 = vmax.f32 %v887_v17, %v980_v40  ;;  %v1012_v46 = vrot.slane %v1011_v41, 2  ;;  %v1024_v47 = vrot.slane %v1023_v42, 2  ;;  %v1029_v51 = vmax.f32 %v928_v30, %v992_v45 }
 0x184   :  { %v890_v13 = vpop.f32.mrf.mxu0  ;;  %v931_v31 = vpop.f32.mrf.mxu1  ;;  %v981_v60 = vadd.f32 %v980_v40, %v887_v17  ;;  %v993_v61 = vadd.f32 %v992_v45, %v928_v30  ;;  %v976_v7 = vrot.slane %v975_v58, 2  ;;  %v988_v8 = vrot.slane %v987_v59, 2 }
 0x185   :  { %v1018_v50 = vrot.slane %v1017_v44, 2  ;;  %v1013_v63 = vmax.f32 %v1011_v41, %v1012_v46  ;;  %v1025_v0 = vmax.f32 %v1023_v42, %v1024_v47  ;;  %v1030_v5 = vrot.slane %v1029_v51, 2 }
 0x186   :  { %v967_v33 = vpop.f32.mrf.mxu0  ;;  %v982_v11 = vrot.slane %v981_v60, 2  ;;  %v994_v12 = vrot.slane %v993_v61, 2  ;;  %v977_v57 = vadd.f32 %v976_v7, %v975_v58  ;;  %v989_v20 = vadd.f32 %v988_v8, %v987_v59 }
 0x187   :  { %v1019_v2 = vmax.f32 %v1017_v44, %v1018_v50  ;;  %v1014_v18 = vrot.slane %v1013_v63, 1  ;;  %v1026_v54 = vrot.slane %v1025_v0, 1  ;;  %v1031_v3 = vmax.f32 %v1029_v51, %v1030_v5 }
 0x188   :  { %v969_v34 = vpop.f32.mrf.mxu0  ;;  %v998_v4 = vrot.slane %v967_v33, 4  ;;  %v983_v14 = vadd.f32 %v982_v11, %v981_v60  ;;  %v995_v6 = vadd.f32 %v994_v12, %v993_v61  ;;  %v978_v28 = vrot.slane %v977_v57, 1 }
 0x189   :  { %v1020_v43 = vrot.slane %v1019_v2, 1  ;;  %v1004_v22 = vrot.slane %v969_v34, 4  ;;  %v1015_v25 = vmax.f32 %v1013_v63, %v1014_v18  ;;  %v1027_v26 = vmax.f32 %v1025_v0, %v1026_v54 }
 0x18a   :  { %v971_v35 = vpop.f32.mrf.mxu0  ;;  %v1032_v10 = vrot.slane %v1031_v3, 1  ;;  %v999_v24 = vadd.f32 %v998_v4, %v967_v33  ;;  %v1035_v16 = vmax.f32 %v967_v33, %v998_v4  ;;  %v990_v21 = vrot.slane %v989_v20, 1 }
 0x18b   :  { %v1021_v27 = vmax.f32 %v1019_v2, %v1020_v43  ;;  %v984_v29 = vrot.slane %v983_v14, 1  ;;  %v996_v17 = vrot.slane %v995_v6, 1  ;;  %v1005_v30 = vadd.f32 %v1004_v22, %v969_v34 }
 0x18c   :  { %v972_v36 = vpop.f32.mrf.mxu0  ;;  %v1041_v62 = vmax.f32 %v969_v34, %v1004_v22  ;;  %v1046_v56 = vmul.f32 0.5, %v1015_v25  ;;  %v1048_v13 = vmul.f32 0.5, %v1027_v26  ;;  %v1974_v31 = vsub.s32 %v1436_v9, %v1960_v55 }
 0x18d   :  { %v1408_v35 = vsub.s32 4, %v1960_v55  ;;  %v1047_v36 = vmul.f32 0.5, %v1021_v27  ;;  %v1033_v33 = vmax.f32 %v1031_v3, %v1032_v10  ;;  %v1000_v38 = vrot.slane %v999_v24, 2 }
 0x18e   :  { %v1036_v39 = vrot.slane %v1035_v16, 2  ;;  %v979_v40 = vadd.f32 %v978_v28, %v977_v57  ;;  %v991_v41 = vadd.f32 %v990_v21, %v989_v20  ;;  %v1978_v42 = vrot.slane %v1962_v52, %v1400_v32 }
 0x18f   :  { %v1404_v44 = vsub.s32 3, %v1960_v55  ;;  %v985_v45 = vadd.f32 %v984_v29, %v983_v14  ;;  %v1981_v34 = vadd.f32 %v996_v17, %v995_v6  ;;  %v1006_v47 = vrot.slane %v1005_v30, 2 }
 0x190   :  { %v1042_v49 = vrot.slane %v1041_v62, 2  ;;  %v1983_v51 = vadd.f32 %v1046_v56, %v979_v40  ;;  %v1985_v58 = vadd.f32 %v1048_v13, %v991_v41  ;;  %v1989_v63 = vmul.f32 0.5, %v1033_v33 }
 0x191   :  { %v1987_v61 = vadd.f32 %v1047_v36, %v985_v45  ;;  %v1991_v0 = vadd.f32 %v1000_v38, %v999_v24  ;;  %v1993_v1 = vmax.f32 %v1035_v16, %v1036_v39  ;;  %v1995_v18 = vadd.f32 %v1006_v47, %v1005_v30 }
 0x192   :  { %v1997_v54 = vmax.f32 %v1041_v62, %v1042_v49 }
 0x193   :  { %v1038_v16 = vrot.slane %v1993_v1, 1 }
 0x194   :  { %v1044_v41 = vrot.slane %v1997_v54, 1 }
 0x1d5   :  { %v1207_v46 = vpop.f32.mrf.mxu1  ;;  %v1248_v50 = vpop.f32.mrf.mxu0 }
 0x1d6   :  { %v1296_v59 = vrot.slane %v1207_v46, 4  ;;  %v1308_v60 = vrot.slane %v1248_v50, 4 }
 0x1d7   :  { %v1209_v2 = vpop.f32.mrf.mxu1  ;;  %v1250_v5 = vpop.f32.mrf.mxu0 }
 0x1d8   :  { %v1297_v7 = vadd.f32 %v1296_v59, %v1207_v46  ;;  %v1333_v8 = vmax.f32 %v1207_v46, %v1296_v59  ;;  %v1302_v11 = vrot.slane %v1209_v2, 4  ;;  %v1309_v12 = vadd.f32 %v1308_v60, %v1248_v50 }
 0x1d9   :  { %v1211_v37 = vpop.f32.mrf.mxu1  ;;  %v1345_v53 = vmax.f32 %v1248_v50, %v1308_v60  ;;  %v1314_v19 = vrot.slane %v1250_v5, 4  ;;  %v1252_v43 = vpop.f32.mrf.mxu0 }
 0x1da   :  { %v1298_v3 = vrot.slane %v1297_v7, 2  ;;  %v1334_v4 = vrot.slane %v1333_v8, 2  ;;  %v1303_v57 = vadd.f32 %v1302_v11, %v1209_v2  ;;  %v1339_v20 = vmax.f32 %v1209_v2, %v1302_v11 }
 0x1db   :  { %v1212_v48 = vpop.f32.mrf.mxu1  ;;  %v1310_v14 = vrot.slane %v1309_v12, 2  ;;  %v1346_v6 = vrot.slane %v1345_v53, 2  ;;  %v1315_v22 = vadd.f32 %v1314_v19, %v1250_v5  ;;  %v1351_v25 = vmax.f32 %v1250_v5, %v1314_v19  ;;  %v1253_v26 = vpop.f32.mrf.mxu0 }
 0x1dc   :  { %v1299_v9 = vadd.f32 %v1298_v3, %v1297_v7  ;;  %v1335_v27 = vmax.f32 %v1333_v8, %v1334_v4  ;;  %v1304_v10 = vrot.slane %v1303_v57, 2  ;;  %v1340_v24 = vrot.slane %v1339_v20, 2 }
 0x1dd   :  { %v1311_v28 = vadd.f32 %v1310_v14, %v1309_v12  ;;  %v1347_v21 = vmax.f32 %v1345_v53, %v1346_v6  ;;  %v1289_v32 = vpop.f32.mrf.mxu1  ;;  %v1316_v29 = vrot.slane %v1315_v22, 2  ;;  %v1352_v38 = vrot.slane %v1351_v25, 2 }
 0x1de   :  { %v1300_v17 = vrot.slane %v1299_v9, 1  ;;  %v1336_v30 = vrot.slane %v1335_v27, 1  ;;  %v1305_v62 = vadd.f32 %v1304_v10, %v1303_v57  ;;  %v1341_v56 = vmax.f32 %v1339_v20, %v1340_v24 }
 0x1df   :  { %v1312_v13 = vrot.slane %v1311_v28, 1  ;;  %v1348_v36 = vrot.slane %v1347_v21, 1  ;;  %v1320_v33 = vrot.slane %v1289_v32, 4  ;;  %v1291_v39 = vpop.f32.mrf.mxu1  ;;  %v1317_v59 = vadd.f32 %v1316_v29, %v1315_v22 }
 0x1e0   :  { %v1337_v40 = vmax.f32 %v1335_v27, %v1336_v30  ;;  %v1306_v45 = vrot.slane %v1305_v62, 1  ;;  %v1342_v46 = vrot.slane %v1341_v56, 1  ;;  %v1301_v2 = vadd.f32 %v1300_v17, %v1299_v9 }
 0x1e1   :  { %v1349_v47 = vmax.f32 %v1347_v21, %v1348_v36  ;;  %v1321_v49 = vadd.f32 %v1320_v33, %v1289_v32  ;;  %v1357_v50 = vmax.f32 %v1289_v32, %v1320_v33  ;;  %v1293_v60 = vpop.f32.mrf.mxu1  ;;  %v1313_v8 = vadd.f32 %v1312_v13, %v1311_v28 }
 0x1e2   :  { %v1368_v5 = vmul.f32 0.5, %v1337_v40  ;;  %v1343_v7 = vmax.f32 %v1341_v56, %v1342_v46  ;;  %v1353_v53 = vmax.f32 %v1351_v25, %v1352_v38  ;;  %v1307_v3 = vadd.f32 %v1306_v45, %v1305_v62 }
 0x1e3   :  { %v1370_v11 = vmul.f32 0.5, %v1349_v47  ;;  %v1322_v12 = vrot.slane %v1321_v49, 2  ;;  %v1358_v37 = vrot.slane %v1357_v50, 2  ;;  %v1294_v19 = vpop.f32.mrf.mxu1  ;;  %v1326_v57 = vrot.slane %v1291_v39, 4 }
 0x1e4   :  { %v1374_v43 = vadd.f32 %v1368_v5, %v1301_v2  ;;  %v1369_v4 = vmul.f32 0.5, %v1343_v7  ;;  %v1318_v14 = vrot.slane %v1317_v59, 1  ;;  %v1354_v6 = vrot.slane %v1353_v53, 1 }
 0x1e5   :  { %v1323_v20 = vadd.f32 %v1322_v12, %v1321_v49  ;;  %v1359_v48 = vmax.f32 %v1357_v50, %v1358_v37  ;;  %v1327_v9 = vadd.f32 %v1326_v57, %v1291_v39  ;;  %v1363_v27 = vmax.f32 %v1291_v39, %v1326_v57 }
 0x1e6   :  { %v1381_v22 = vsel %vm1380_vm9, %v1983_v51, %v1374_v43  ;;  %v1375_v26 = vadd.f32 %v1369_v4, %v1307_v3  ;;  %v1002_v10 = vrot.slane %v1991_v0, 1  ;;  %v1039_v24 = vmax.f32 %v1993_v1, %v1038_v16 }
 0x1e7   :  { %v1376_v25 = vadd.f32 %v1370_v11, %v1313_v8  ;;  %v1360_v28 = vrot.slane %v1359_v48, 1  ;;  %v1420_v21 = vadd.f32 %v1967_v15, %v1381_v22  ;;  %v1355_v29 = vmax.f32 %v1353_v53, %v1354_v6 }
 0x1e8   :  { %v1382_v32 = vsel %vm1380_vm9, %v1987_v61, %v1375_v26  ;;  %v1328_v17 = vrot.slane %v1327_v9, 2  ;;  %v1324_v62 = vrot.slane %v1323_v20, 1  ;;  %v1364_v56 = vrot.slane %v1363_v27, 2 }
 0x1e9   :  { %v1421_v30 = vadd.f32 %v1970_v23, %v1382_v32  ;;  %v1361_v51 = vmax.f32 %v1359_v48, %v1360_v28  ;;  %v1045_v13 = vmax.f32 %v1997_v54, %v1044_v41  ;;  %v1319_v36 = vadd.f32 %v1318_v14, %v1317_v59 }
 0x1ea   :  { %v1371_v33 = vmul.f32 0.5, %v1355_v29  ;;  %v1329_v38 = vadd.f32 %v1328_v17, %v1327_v9  ;;  %v1405_v15 = vrot.slane %v1962_v52, %v1404_v44  ;;  %v1365_v39 = vmax.f32 %v1363_v27, %v1364_v56 }
 0x1eb   :  { %v1432_v1 = vcombine.low %v1420_v21, %v1421_v30  ;;  %v1372_v16 = vmul.f32 0.5, %v1361_v51  ;;  %v1055_v61 = vadd.f32 %v1989_v63, %v1981_v34  ;;  %v1008_v23 = vrot.slane %v1995_v18, 1 }
 0x1ec   :  { %v1383_v40 = vsel %vm1380_vm9, %v1985_v58, %v1376_v25  ;;  %v1377_v45 = vadd.f32 %v1371_v33, %v1319_v36  ;;  %v1050_v54 = vmul.f32 0.5, %v1039_v24  ;;  %v1325_v41 = vadd.f32 %v1324_v62, %v1323_v20 }
 0x1ed   :  { %v1330_v46 = vrot.slane %v1329_v38, 1  ;;  %v1366_v47 = vrot.slane %v1365_v39, 1  ;;  %v1003_v49 = vadd.f32 %v1002_v10, %v1991_v0  ;;  %v1051_v50 = vmul.f32 0.5, %v1045_v13 }
 0x1ee   :  { %v1384_v59 = vsel %vm1380_vm9, %v1055_v61, %v1377_v45  ;;  %v1412_v44 = vsub.s32 5, %v1960_v55  ;;  %v1422_v60 = vadd.f32 %v1978_v42, %v1383_v40  ;;  %v1378_v34 = vadd.f32 %v1372_v16, %v1325_v41 }
 0x1ef   :  { %v1423_v63 = vadd.f32 %v1405_v15, %v1384_v59  ;;  %v1367_v2 = vmax.f32 %v1365_v39, %v1366_v47  ;;  %v1009_v5 = vadd.f32 %v1008_v23, %v1995_v18  ;;  %v1056_v58 = vadd.f32 %v1050_v54, %v1003_v49 }
 0x1f0   :  { %v1331_v8 = vadd.f32 %v1330_v46, %v1329_v38  ;;  %v1409_v0 = vrot.slane %v1962_v52, %v1408_v35  ;;  %v1413_v37 = vrot.slane %v1962_v52, %v1412_v44  ;;  %v1440_v53 = vrot.slane %v1432_v1, %v1974_v31 }
 0x1f1   :  { %v1433_v7 = vcombine.low %v1422_v60, %v1423_v63  ;;  %v1373_v11 = vmul.f32 0.5, %v1367_v2  ;;  %v1057_v12 = vadd.f32 %v1051_v50, %v1009_v5  ;;  %v1385_v42 = vsel %vm1380_vm9, %v1056_v58, %v1378_v34 }
 0x1f2   :  { %v1424_v4 = vadd.f32 %v1409_v0, %v1385_v42 }
 0x1f3   :  { %v1447_v19 = vrot.slane %v1433_v7, %v1974_v31  ;;  %v1379_v43 = vadd.f32 %v1373_v11, %v1331_v8 }
 0x1f5   :  { %v1448_v3 = vcombine.low %v1440_v53, %v1447_v19  ;;  %v1386_v18 = vsel %vm1380_vm9, %v1057_v12, %v1379_v43 }
 0x1f6   :  { %v1425_v57 = vadd.f32 %v1413_v37, %v1386_v18 }
 0x1f7   :  { %1459 = vst [vmem:[%s2040_s3] sm:$0xff] %v1448_v3 }
 0x1f8   :  { %v1449_v55 = vcombine.low %v1424_v4, %v1425_v57 }
 0x1fa   :  { %1483 = vst.sshfl [vmem:[%s2040_s3 + $0x8] sm:$0x33 pattern:$0x76325410] %v1449_v55 }

</bundles_post_ra>
